<compile_context>
chip_gen: v6e
topology: v6e:2x2x1
jax: 0.10.0
libtpu: 0.0.40
codegen_flags: <defaults>
</compile_context>

<pallas_src>
import functools

import jax
import jax.numpy as jnp
from jax.experimental import pallas as pl
from jax.experimental.pallas import tpu as pltpu


HID = (128, 128, 256, 256, 512)      # hidden widths of layers 1..5
BIAS_SLAB_SHAPE = (8, 512)           # all six biases packed in one VMEM tile


def _round_up(n, m):
    return ((n + m - 1) // m) * m


def dqn_kernel(x_ref,
               w1_ref, w2_ref, w3_ref, w4_ref, w5_ref, w6_ref,
               b_ref, out_ref):
    """One batch tile of the 6-layer DQN MLP. bf16 MXU inputs, f32 accumulation."""
    f32 = jnp.float32
    bf16 = jnp.bfloat16
    out_w = out_ref.shape[-1]        # lane-dense padded action width

    x = x_ref[...].astype(bf16)

    # layer1 -> dropout (identity, eval) -> relu
    h1 = jnp.dot(x, w1_ref[...], preferred_element_type=f32) + b_ref[0:1, 0:128]
    h1 = jnp.maximum(h1, 0.0)

    # layer2 + residual -> relu          (residual add in f32)
    h2 = (jnp.dot(h1.astype(bf16), w2_ref[...], preferred_element_type=f32)
          + b_ref[1:2, 0:128])
    h2 = jnp.maximum(h2 + h1, 0.0)

    # layer3 -> dropout (identity) -> relu
    h3 = (jnp.dot(h2.astype(bf16), w3_ref[...], preferred_element_type=f32)
          + b_ref[2:3, 0:256])
    h3 = jnp.maximum(h3, 0.0)

    # layer4 + residual -> relu
    h4 = (jnp.dot(h3.astype(bf16), w4_ref[...], preferred_element_type=f32)
          + b_ref[3:4, 0:256])
    h4 = jnp.maximum(h4 + h3, 0.0)

    # layer5 -> dropout (identity) -> relu
    h5 = (jnp.dot(h4.astype(bf16), w5_ref[...], preferred_element_type=f32)
          + b_ref[4:5, 0:512])
    h5 = jnp.maximum(h5, 0.0)

    # layer6 (no activation), lane-dense zero-padded output
    out_ref[...] = (jnp.dot(h5.astype(bf16), w6_ref[...], preferred_element_type=f32)
                    + b_ref[5:6, 0:out_w])


def init_params(key, n_observations, n_actions):
    """f32 params matching nn.Linear default init; weights stored [in, out]."""
    dims = [(n_observations, 128), (128, 128), (128, 256),
            (256, 256), (256, 512), (512, n_actions)]
    raw = {}
    for i, (fan_in, fan_out) in enumerate(dims, start=1):
        key, kw, kb = jax.random.split(key, 3)
        bound = 1.0 / (fan_in ** 0.5)
        raw[f"w{i}"] = jax.random.uniform(kw, (fan_in, fan_out), jnp.float32,
                                          -bound, bound)
        raw[f"b{i}"] = jax.random.uniform(kb, (fan_out,), jnp.float32,
                                          -bound, bound)
    return raw


def pack_params(raw, n_actions):
    """One-time kernel-operand prep: bf16 weights, lane-dense padded layer6,
    and a single (8, 512) bias slab."""
    assert n_actions <= BIAS_SLAB_SHAPE[1]
    pad_out = _round_up(max(n_actions, 128), 128)

    kp = {f"w{i}": raw[f"w{i}"].astype(jnp.bfloat16) for i in range(1, 6)}

    w6_pad = jnp.zeros((raw["w6"].shape[0], pad_out), jnp.float32)
    kp["w6"] = w6_pad.at[:, :n_actions].set(raw["w6"]).astype(jnp.bfloat16)

    bias = jnp.zeros(BIAS_SLAB_SHAPE, jnp.float32)
    for i, width in enumerate(HID, start=1):
        bias = bias.at[i - 1, :width].set(raw[f"b{i}"])
    bias = bias.at[5, :n_actions].set(raw["b6"])
    kp["bias"] = bias
    return kp


@functools.partial(jax.jit, static_argnames=("n_actions", "tile_b"))
def dqn_forward(x, kparams, *, n_actions, tile_b=128):
    """x: [B, n_observations] f32; kparams from pack_params(). Returns [B, n_actions] f32."""
    B, n_obs = x.shape
    pad_out = kparams["w6"].shape[1]

    # Batch tile: sized against v7x's 64 MiB VMEM budget (way under at these
    # feature widths); pad batch to a multiple of the tile.
    tb = min(tile_b, _round_up(B, 8))
    b_pad = _round_up(B, tb)
    if b_pad != B:
        x = jnp.pad(x, ((0, b_pad - B), (0, 0)))
    nb = b_pad // tb

    weights = [kparams[f"w{i}"] for i in range(1, 7)]
    operands = (x, *weights, kparams["bias"])

    x_spec = pl.BlockSpec((tb, n_obs), lambda i: (i, 0))
    # Weights/bias: full-array blocks with a constant index map -> resident in
    # VMEM across all batch-grid steps (no per-step re-DMA).
    w_specs = [pl.BlockSpec(w.shape, lambda i: (0, 0)) for w in weights]
    b_spec = pl.BlockSpec(BIAS_SLAB_SHAPE, lambda i: (0, 0))
    out_spec = pl.BlockSpec((tb, pad_out), lambda i: (i, 0))

    dims = [(n_obs, 128), (128, 128), (128, 256),
            (256, 256), (256, 512), (512, pad_out)]
    flops = 2 * b_pad * sum(fi * fo for fi, fo in dims)
    bytes_accessed = (x.size * 4                       # activations in
                      + sum(w.size * 2 for w in weights)  # bf16 weights
                      + kparams["bias"].size * 4
                      + b_pad * pad_out * 4)           # output

    out = pl.pallas_call(
        dqn_kernel,
        out_shape=jax.ShapeDtypeStruct((b_pad, pad_out), jnp.float32),
        grid=(nb,),
        in_specs=[x_spec, *w_specs, b_spec],
        out_specs=out_spec,
        compiler_params=pltpu.CompilerParams(
            dimension_semantics=("parallel",),   # v7x: shard batch tiles over both TCs
        ),
        cost_estimate=pl.CostEstimate(
            flops=int(flops), transcendentals=0,
            bytes_accessed=int(bytes_accessed)),
    )(*operands)

    return out[:B, :n_actions]


def dqn_reference_f32(x, raw):
    """Pure-f32 reference of the PyTorch forward (eval-mode dropout)."""
    h1 = jnp.maximum(x @ raw["w1"] + raw["b1"], 0.0)
    h2 = jnp.maximum(h1 @ raw["w2"] + raw["b2"] + h1, 0.0)
    h3 = jnp.maximum(h2 @ raw["w3"] + raw["b3"], 0.0)
    h4 = jnp.maximum(h3 @ raw["w4"] + raw["b4"] + h3, 0.0)
    h5 = jnp.maximum(h4 @ raw["w5"] + raw["b5"], 0.0)
    return h5 @ raw["w6"] + raw["b6"]


def dqn_reference_bf16(x, raw):
    """Mirror of the kernel numerics: bf16 matmul inputs, f32 accumulation."""
    def lin(h, w, b):
        return jnp.dot(h.astype(jnp.bfloat16), w.astype(jnp.bfloat16),
                       preferred_element_type=jnp.float32) + b
    h1 = jnp.maximum(lin(x, raw["w1"], raw["b1"]), 0.0)
    h2 = jnp.maximum(lin(h1, raw["w2"], raw["b2"]) + h1, 0.0)
    h3 = jnp.maximum(lin(h2, raw["w3"], raw["b3"]), 0.0)
    h4 = jnp.maximum(lin(h3, raw["w4"], raw["b4"]) + h3, 0.0)
    h5 = jnp.maximum(lin(h4, raw["w5"], raw["b5"]), 0.0)
    return lin(h5, raw["w6"], raw["b6"])


if __name__ == "__main__":
    n_observations = 32
    n_actions = 8
    batch = 128          # perf review: feed >= 128 MXU rows per pass

    key = jax.random.PRNGKey(0)
    key, kx = jax.random.split(key)
    raw = init_params(key, n_observations, n_actions)
    kparams = pack_params(raw, n_actions)      # one-time bf16 cast / pad / pack
    x = jax.random.normal(kx, (batch, n_observations), jnp.float32)

    out = dqn_forward(x, kparams, n_actions=n_actions)
    out = jax.block_until_ready(out)
    assert out.shape == (batch, n_actions)

    # Exact-path check vs a plain-JAX mirror of the kernel numerics.
    ref_bf16 = dqn_reference_bf16(x, raw)
    assert jnp.allclose(out, ref_bf16, atol=2e-3, rtol=2e-3), \
        "mismatch vs bf16-mirror reference"

    # Semantics check vs the pure-f32 PyTorch-equivalent forward (loose tol
    # accounts for the intentional bf16 weight/activation quantization).
    ref_f32 = dqn_reference_f32(x, raw)
    assert jnp.allclose(out, ref_f32, atol=1e-1, rtol=1e-1), \
        "mismatch vs f32 reference"

    print("KERNEL_OK")
</pallas_src>

<mosaic_0001>
module attributes {stable_mosaic.version = 11 : i64} {
  func.func @dqn_kernel(%arg0: i32, %arg1: memref<128x32xf32, #tpu.memory_space<vmem>>, %arg2: memref<32x128xbf16, #tpu.memory_space<vmem>>, %arg3: memref<128x128xbf16, #tpu.memory_space<vmem>>, %arg4: memref<128x256xbf16, #tpu.memory_space<vmem>>, %arg5: memref<256x256xbf16, #tpu.memory_space<vmem>>, %arg6: memref<256x512xbf16, #tpu.memory_space<vmem>>, %arg7: memref<512x128xbf16, #tpu.memory_space<vmem>>, %arg8: memref<8x512xf32, #tpu.memory_space<vmem>>, %arg9: memref<128x128xf32, #tpu.memory_space<vmem>>) attributes {dimension_semantics = [#tpu.dimension_semantics<parallel>], iteration_bounds = array<i64: 1>, scalar_prefetch = 0 : i64, scratch_operands = 0 : i64, tpu.core_type = #tpu.core_type<tc>, window_params = [{transform_indices = @transform_0, window_bounds = array<i64: 128, 32>}, {pipeline_mode = #tpu.pipeline_mode<synchronous>, transform_indices = @transform_1, window_bounds = array<i64: 32, 128>}, {pipeline_mode = #tpu.pipeline_mode<synchronous>, transform_indices = @transform_2, window_bounds = array<i64: 128, 128>}, {pipeline_mode = #tpu.pipeline_mode<synchronous>, transform_indices = @transform_3, window_bounds = array<i64: 128, 256>}, {pipeline_mode = #tpu.pipeline_mode<synchronous>, transform_indices = @transform_4, window_bounds = array<i64: 256, 256>}, {pipeline_mode = #tpu.pipeline_mode<synchronous>, transform_indices = @transform_5, window_bounds = array<i64: 256, 512>}, {pipeline_mode = #tpu.pipeline_mode<synchronous>, transform_indices = @transform_6, window_bounds = array<i64: 512, 128>}, {pipeline_mode = #tpu.pipeline_mode<synchronous>, transform_indices = @transform_7, window_bounds = array<i64: 8, 512>}, {transform_indices = @transform_8, window_bounds = array<i64: 128, 128>}]} {
    %c0 = arith.constant 0 : index
    %c0_0 = arith.constant 0 : index
    %0 = vector.load %arg1[%c0, %c0_0] : memref<128x32xf32, #tpu.memory_space<vmem>>, vector<128x32xf32>
    %1 = arith.truncf %0 : vector<128x32xf32> to vector<128x32xbf16>
    %c0_1 = arith.constant 0 : index
    %c0_2 = arith.constant 0 : index
    %2 = vector.load %arg2[%c0_1, %c0_2] : memref<32x128xbf16, #tpu.memory_space<vmem>>, vector<32x128xbf16>
    %cst = arith.constant dense<0.000000e+00> : vector<128x128xf32>
    %3 = tpu.matmul %1, %2, %cst {dimension_numbers = #tpu.dot_dimension_numbers<[1], [0], [0], [1], [0, 0, 1, 1], [], []>} : vector<128x32xbf16>, vector<32x128xbf16>, vector<128x128xf32> -> vector<128x128xf32>
    %c0_3 = arith.constant 0 : index
    %c0_4 = arith.constant 0 : index
    %4 = vector.load %arg8[%c0_3, %c0_4] : memref<8x512xf32, #tpu.memory_space<vmem>>, vector<1x128xf32>
    %5 = vector.broadcast %4 : vector<1x128xf32> to vector<128x128xf32>
    %6 = arith.addf %3, %5 : vector<128x128xf32>
    %cst_5 = arith.constant 0.000000e+00 : f32
    %7 = vector.broadcast %cst_5 : f32 to vector<128x128xf32>
    %8 = arith.maximumf %6, %7 : vector<128x128xf32>
    %9 = arith.truncf %8 : vector<128x128xf32> to vector<128x128xbf16>
    %c0_6 = arith.constant 0 : index
    %c0_7 = arith.constant 0 : index
    %10 = vector.load %arg3[%c0_6, %c0_7] : memref<128x128xbf16, #tpu.memory_space<vmem>>, vector<128x128xbf16>
    %cst_8 = arith.constant dense<0.000000e+00> : vector<128x128xf32>
    %11 = tpu.matmul %9, %10, %cst_8 {dimension_numbers = #tpu.dot_dimension_numbers<[1], [0], [0], [1], [0, 0, 1, 1], [], []>} : vector<128x128xbf16>, vector<128x128xbf16>, vector<128x128xf32> -> vector<128x128xf32>
    %c1 = arith.constant 1 : index
    %c0_9 = arith.constant 0 : index
    %12 = vector.load %arg8[%c1, %c0_9] : memref<8x512xf32, #tpu.memory_space<vmem>>, vector<1x128xf32>
    %13 = vector.broadcast %12 : vector<1x128xf32> to vector<128x128xf32>
    %14 = arith.addf %11, %13 : vector<128x128xf32>
    %15 = arith.addf %14, %8 : vector<128x128xf32>
    %cst_10 = arith.constant 0.000000e+00 : f32
    %16 = vector.broadcast %cst_10 : f32 to vector<128x128xf32>
    %17 = arith.maximumf %15, %16 : vector<128x128xf32>
    %18 = arith.truncf %17 : vector<128x128xf32> to vector<128x128xbf16>
    %c0_11 = arith.constant 0 : index
    %c0_12 = arith.constant 0 : index
    %19 = vector.load %arg4[%c0_11, %c0_12] : memref<128x256xbf16, #tpu.memory_space<vmem>>, vector<128x256xbf16>
    %cst_13 = arith.constant dense<0.000000e+00> : vector<128x256xf32>
    %20 = tpu.matmul %18, %19, %cst_13 {dimension_numbers = #tpu.dot_dimension_numbers<[1], [0], [0], [1], [0, 0, 1, 1], [], []>} : vector<128x128xbf16>, vector<128x256xbf16>, vector<128x256xf32> -> vector<128x256xf32>
    %c2 = arith.constant 2 : index
    %c0_14 = arith.constant 0 : index
    %21 = vector.load %arg8[%c2, %c0_14] : memref<8x512xf32, #tpu.memory_space<vmem>>, vector<1x256xf32>
    %22 = vector.broadcast %21 : vector<1x256xf32> to vector<128x256xf32>
    %23 = arith.addf %20, %22 : vector<128x256xf32>
    %cst_15 = arith.constant 0.000000e+00 : f32
    %24 = vector.broadcast %cst_15 : f32 to vector<128x256xf32>
    %25 = arith.maximumf %23, %24 : vector<128x256xf32>
    %26 = arith.truncf %25 : vector<128x256xf32> to vector<128x256xbf16>
    %c0_16 = arith.constant 0 : index
    %c0_17 = arith.constant 0 : index
    %27 = vector.load %arg5[%c0_16, %c0_17] : memref<256x256xbf16, #tpu.memory_space<vmem>>, vector<256x256xbf16>
    %cst_18 = arith.constant dense<0.000000e+00> : vector<128x256xf32>
    %28 = tpu.matmul %26, %27, %cst_18 {dimension_numbers = #tpu.dot_dimension_numbers<[1], [0], [0], [1], [0, 0, 1, 1], [], []>} : vector<128x256xbf16>, vector<256x256xbf16>, vector<128x256xf32> -> vector<128x256xf32>
    %c3 = arith.constant 3 : index
    %c0_19 = arith.constant 0 : index
    %29 = vector.load %arg8[%c3, %c0_19] : memref<8x512xf32, #tpu.memory_space<vmem>>, vector<1x256xf32>
    %30 = vector.broadcast %29 : vector<1x256xf32> to vector<128x256xf32>
    %31 = arith.addf %28, %30 : vector<128x256xf32>
    %32 = arith.addf %31, %25 : vector<128x256xf32>
    %cst_20 = arith.constant 0.000000e+00 : f32
    %33 = vector.broadcast %cst_20 : f32 to vector<128x256xf32>
    %34 = arith.maximumf %32, %33 : vector<128x256xf32>
    %35 = arith.truncf %34 : vector<128x256xf32> to vector<128x256xbf16>
    %c0_21 = arith.constant 0 : index
    %c0_22 = arith.constant 0 : index
    %36 = vector.load %arg6[%c0_21, %c0_22] : memref<256x512xbf16, #tpu.memory_space<vmem>>, vector<256x512xbf16>
    %cst_23 = arith.constant dense<0.000000e+00> : vector<128x512xf32>
    %37 = tpu.matmul %35, %36, %cst_23 {dimension_numbers = #tpu.dot_dimension_numbers<[1], [0], [0], [1], [0, 0, 1, 1], [], []>} : vector<128x256xbf16>, vector<256x512xbf16>, vector<128x512xf32> -> vector<128x512xf32>
    %c4 = arith.constant 4 : index
    %c0_24 = arith.constant 0 : index
    %38 = vector.load %arg8[%c4, %c0_24] : memref<8x512xf32, #tpu.memory_space<vmem>>, vector<1x512xf32>
    %39 = vector.broadcast %38 : vector<1x512xf32> to vector<128x512xf32>
    %40 = arith.addf %37, %39 : vector<128x512xf32>
    %cst_25 = arith.constant 0.000000e+00 : f32
    %41 = vector.broadcast %cst_25 : f32 to vector<128x512xf32>
    %42 = arith.maximumf %40, %41 : vector<128x512xf32>
    %43 = arith.truncf %42 : vector<128x512xf32> to vector<128x512xbf16>
    %c0_26 = arith.constant 0 : index
    %c0_27 = arith.constant 0 : index
    %44 = vector.load %arg7[%c0_26, %c0_27] : memref<512x128xbf16, #tpu.memory_space<vmem>>, vector<512x128xbf16>
    %cst_28 = arith.constant dense<0.000000e+00> : vector<128x128xf32>
    %45 = tpu.matmul %43, %44, %cst_28 {dimension_numbers = #tpu.dot_dimension_numbers<[1], [0], [0], [1], [0, 0, 1, 1], [], []>} : vector<128x512xbf16>, vector<512x128xbf16>, vector<128x128xf32> -> vector<128x128xf32>
    %c5 = arith.constant 5 : index
    %c0_29 = arith.constant 0 : index
    %46 = vector.load %arg8[%c5, %c0_29] : memref<8x512xf32, #tpu.memory_space<vmem>>, vector<1x128xf32>
    %47 = vector.broadcast %46 : vector<1x128xf32> to vector<128x128xf32>
    %48 = arith.addf %45, %47 : vector<128x128xf32>
    %c0_30 = arith.constant 0 : index
    %c0_31 = arith.constant 0 : index
    %49 = vector.load %arg9[%c0_30, %c0_31] : memref<128x128xf32, #tpu.memory_space<vmem>>, vector<128x128xf32>
    tpu.vector_store %arg9[%c0_30, %c0_31], %48 {strides = array<i32>} : memref<128x128xf32, #tpu.memory_space<vmem>>, vector<128x128xf32>,
    return
  }
  func.func @transform_0(%arg0: i32) -> (i32, i32) {
    %c0_i32 = arith.constant 0 : i32
    %c0_i32_0 = arith.constant 0 : i32
    return %arg0, %c0_i32 : i32, i32
  }
  func.func @transform_1(%arg0: i32) -> (i32, i32) {
    %c0_i32 = arith.constant 0 : i32
    %c0_i32_0 = arith.constant 0 : i32
    %c0_i32_1 = arith.constant 0 : i32
    return %c0_i32, %c0_i32_0 : i32, i32
  }
  func.func @transform_2(%arg0: i32) -> (i32, i32) {
    %c0_i32 = arith.constant 0 : i32
    %c0_i32_0 = arith.constant 0 : i32
    %c0_i32_1 = arith.constant 0 : i32
    return %c0_i32, %c0_i32_0 : i32, i32
  }
  func.func @transform_3(%arg0: i32) -> (i32, i32) {
    %c0_i32 = arith.constant 0 : i32
    %c0_i32_0 = arith.constant 0 : i32
    %c0_i32_1 = arith.constant 0 : i32
    return %c0_i32, %c0_i32_0 : i32, i32
  }
  func.func @transform_4(%arg0: i32) -> (i32, i32) {
    %c0_i32 = arith.constant 0 : i32
    %c0_i32_0 = arith.constant 0 : i32
    %c0_i32_1 = arith.constant 0 : i32
    return %c0_i32, %c0_i32_0 : i32, i32
  }
  func.func @transform_5(%arg0: i32) -> (i32, i32) {
    %c0_i32 = arith.constant 0 : i32
    %c0_i32_0 = arith.constant 0 : i32
    %c0_i32_1 = arith.constant 0 : i32
    return %c0_i32, %c0_i32_0 : i32, i32
  }
  func.func @transform_6(%arg0: i32) -> (i32, i32) {
    %c0_i32 = arith.constant 0 : i32
    %c0_i32_0 = arith.constant 0 : i32
    %c0_i32_1 = arith.constant 0 : i32
    return %c0_i32, %c0_i32_0 : i32, i32
  }
  func.func @transform_7(%arg0: i32) -> (i32, i32) {
    %c0_i32 = arith.constant 0 : i32
    %c0_i32_0 = arith.constant 0 : i32
    %c0_i32_1 = arith.constant 0 : i32
    return %c0_i32, %c0_i32_0 : i32, i32
  }
  func.func @transform_8(%arg0: i32) -> (i32, i32) {
    %c0_i32 = arith.constant 0 : i32
    %c0_i32_0 = arith.constant 0 : i32
    return %arg0, %c0_i32 : i32, i32
  }
}

</mosaic_0001>

<bundles_post_ra>
// kernel: dqn_forward.1
= control target key start
LH: loop header
LB: loop body
LE: loop exit
PB: predicated region body
PF: predicated region fallthrough
CT: control target
= control target key end

     0   :  { %13 = vsyncpa [#allocation3], 0  ;;  %s3866_s0 = inlined_call_operand.vmem [shape: f32[128,32], index: 0, kind: input, shape index: {}]   ;;  %s3867_s1 = inlined_call_operand.hbm [shape: bf16[32,128], index: 1, kind: input, shape index: {}]   ;;  %s3868_s2 = inlined_call_operand.hbm [shape: bf16[128,128], index: 2, kind: input, shape index: {}]   ;;  %s3869_s3 = inlined_call_operand.vmem [shape: bf16[128,256], index: 3, kind: input, shape index: {}]   ;;  %s3870_s4 = inlined_call_operand.hbm [shape: bf16[256,256], index: 4, kind: input, shape index: {}]   ;;  %s3871_s5 = inlined_call_operand.hbm [shape: bf16[256,512], index: 5, kind: input, shape index: {}]   ;;  %s3872_s6 = inlined_call_operand.hbm [shape: bf16[512,128], index: 6, kind: input, shape index: {}]   ;;  %s3873_s7 = inlined_call_operand.vmem [shape: f32[8,512], index: 7, kind: input, shape index: {}]   ;;  %s3874_s8 = inlined_call_operand.vmem [shape: f32[128,128], index: 8, kind: output, shape index: {}]  }
   0x1   :  { %14 = vsyncpa [#allocation5], 0 }
   0x2   :  { %15 = vsyncpa [#allocation8], 0  ;;  %s3057_s27 = smov [#allocation4]   ;;  %s3058_s29 = smov [#allocation7]  }
   0x3   :  { %s35_s28 = sshll.u32 %s3057_s27, 4  ;;  %s61_s30 = sshll.u32 %s3058_s29, 4  ;;  %s36_s28 = int_to_ptr.vmem [resolvable:$true] %s35_s28  ;;  %s62_s30 = int_to_ptr.vmem [resolvable:$true] %s61_s30 }
   0x4   :  { %s2959_s9 = scalar_lea.vmem %s36_s28, 1024  ;;  %p2964_p1 = scmp.lt.s32.totalorder %s36_s28, %s36_s28 }
   0x5   :  { %p2960_p0 = scmp.ne.s32.totalorder %s36_s28, %s2959_s9  ;;  %p2965_p2 = scmp.lt.s32.totalorder %s2959_s9, %s2959_s9 }
   0x7   :  { %p2966_p3 = por %p2965_p2, %p2964_p1 }
   0x9   :  { %p2967_p4 = pnand %p2966_p3, %p2960_p0 }
   0xb   :  { %2970 = shalt.err (!%p2967_p4)
}
   0xc   :  { %s3059_s10 = smov 64   ;;  %s3060_s11 = smov 4  }
   0xd   :  { %41 = dma.hbm_to_vmem [thread:$0]  %s3868_s2, 1024, %s36_s28, [#allocation5], %s3059_s10, %s3059_s10, %s3060_s11  }
   0xe   :  { %s2979_s14 = scalar_lea.vmem %s62_s30, 8192  ;;  %p2984_p6 = scmp.lt.s32.totalorder %s62_s30, %s62_s30 }
   0xf   :  { %p2980_p5 = scmp.ne.s32.totalorder %s62_s30, %s2979_s14  ;;  %p2985_p7 = scmp.lt.s32.totalorder %s2979_s14, %s2979_s14 }
  0x11   :  { %p2986_p8 = por %p2985_p7, %p2984_p6 }
  0x13   :  { %p2987_p9 = pnand %p2986_p8, %p2980_p5 }
  0x15   :  { %2990 = shalt.err (!%p2987_p9)
}
  0x16   :  { %s3061_s15 = smov 256   ;;  %s3062_s16 = smov 16  }
  0x17   :  { %67 = dma.hbm_to_vmem [thread:$0]  %s3871_s5, 8192, %s62_s30, [#allocation8], %s3061_s15, %s3061_s15, %s3062_s16  }
  0x18   :  { %s3063_s19 = smov [#allocation2]   ;;  %s3064_s21 = smov [#allocation6]  }
  0x19   :  { %s23_s20 = sshll.u32 %s3063_s19, 4  ;;  %s49_s22 = sshll.u32 %s3064_s21, 4  ;;  %s24_s20 = int_to_ptr.vmem [resolvable:$true] %s23_s20  ;;  %s50_s22 = int_to_ptr.vmem [resolvable:$true] %s49_s22 }
  0x1a   :  { %s2999_s2 = scalar_lea.vmem %s24_s20, 256  ;;  %p3004_p11 = scmp.lt.s32.totalorder %s24_s20, %s24_s20 }
  0x1b   :  { %p3000_p10 = scmp.ne.s32.totalorder %s24_s20, %s2999_s2  ;;  %p3005_p12 = scmp.lt.s32.totalorder %s2999_s2, %s2999_s2 }
  0x1d   :  { %p3006_p13 = por %p3005_p12, %p3004_p11 }
  0x1f   :  { %p3007_p0 = pnand %p3006_p13, %p3000_p10 }
  0x21   :  { %3010 = shalt.err (!%p3007_p0)
}
  0x22   :  { %29 = dma.hbm_to_vmem [thread:$0]  %s3867_s1, 256, %s24_s20, [#allocation3], %s3059_s10, %s3059_s10, %s3060_s11  }
  0x23   :  { %s3019_s5 = scalar_lea.vmem %s50_s22, 4096  ;;  %p3024_p2 = scmp.lt.s32.totalorder %s50_s22, %s50_s22 }
  0x24   :  { %p3020_p1 = scmp.ne.s32.totalorder %s50_s22, %s3019_s5  ;;  %p3025_p3 = scmp.lt.s32.totalorder %s3019_s5, %s3019_s5 }
  0x26   :  { %p3026_p4 = por %p3025_p3, %p3024_p2 }
  0x28   :  { %p3027_p5 = pnand %p3026_p4, %p3020_p1 }
  0x2a   :  { %3030 = shalt.err (!%p3027_p5)
}
  0x2b   :  { %s3065_s25 = smov 128   ;;  %s3066_s26 = smov 8  }
  0x2c   :  { %55 = dma.hbm_to_vmem [thread:$0]  %s3870_s4, 4096, %s50_s22, [#allocation5], %s3065_s25, %s3065_s25, %s3066_s26  }
  0x2d   :  { %s3067_s29 = smov [#allocation9]  }
  0x2e   :  { %s73_s30 = sshll.u32 %s3067_s29, 4  ;;  %s74_s30 = int_to_ptr.vmem [resolvable:$true] %s73_s30 }
  0x2f   :  { %s3039_s9 = scalar_lea.vmem %s74_s30, 4096  ;;  %p3044_p7 = scmp.lt.s32.totalorder %s74_s30, %s74_s30 }
  0x30   :  { %p3040_p6 = scmp.ne.s32.totalorder %s74_s30, %s3039_s9  ;;  %p3045_p8 = scmp.lt.s32.totalorder %s3039_s9, %s3039_s9 }
  0x32   :  { %p3046_p9 = por %p3045_p8, %p3044_p7 }
  0x34   :  { %p3047_p10 = pnand %p3046_p9, %p3040_p6 }
  0x36   :  { %3050 = shalt.err (!%p3047_p10)
}
  0x37   :  { %79 = dma.hbm_to_vmem [thread:$0]  %s3872_s6, 4096, %s74_s30, [#allocation8], %s3059_s10, %s3059_s10, %s3060_s11  }
  0x38   :  { %3051 = dma.done.wait [#allocation3], 256  }
  0x39   :  { %3052 = vsyncadd [#allocation3], 4294967040 }
  0x3a   :  { %3053 = dma.done.wait [#allocation5], 5120  }
  0x3b   :  { %3054 = vsyncadd [#allocation5], 4294962176 }
  0x3c   :  { %3055 = dma.done.wait [#allocation8], 12288  }
  0x3d   :  { %3056 = vsyncadd [#allocation8], 4294955008  ;;  %v2741_v0 = vld [vmem:[#allocation2 + $0x8] sm:$0xff]   ;;  %v2742_v1 = vld [vmem:[#allocation2] sm:$0xff]   ;;  %vm139_vm0 = vcmask 261120  }
  0x3e   :  { %2677 = vmatprep.subr.bf16.mxu0 %v2741_v0  ;;  %v98_v2 = vld [vmem:[%s3866_s0] sm:$0xff]  ;;  %v99_v3 = vld [vmem:[%s3866_s0 + $0x8] sm:$0xff]  ;;  %v100_v5 = vld [vmem:[%s3866_s0 + $0x10] sm:$0xff] }
  0x3f   :  { %2678 = vmatpush3.bf16.msra.mxu0 %v2741_v0  ;;  %v114_v4 = vpack.c.bf16 %v99_v3, %v98_v2  ;;  %v101_v6 = vld [vmem:[%s3866_s0 + $0x18] sm:$0xff]  ;;  %v102_v7 = vld [vmem:[%s3866_s0 + $0x20] sm:$0xff]  ;;  %v103_v8 = vld [vmem:[%s3866_s0 + $0x28] sm:$0xff] }
  0x40   :  { %2679 = vmatprep.subr.bf16.mxu0 %v2742_v1  ;;  %v115_v9 = vpack.c.bf16 %v101_v6, %v100_v5  ;;  %v116_v10 = vpack.c.bf16 %v103_v8, %v102_v7  ;;  %v2743_v11 = vld [vmem:[#allocation4 + $0x38] sm:$0xff]   ;;  %v104_v12 = vld [vmem:[%s3866_s0 + $0x30] sm:$0xff]  ;;  %v105_v13 = vld [vmem:[%s3866_s0 + $0x38] sm:$0xff] }
  0x41   :  { %2681 = vmatprep.mubr.msk.bf16.mxu0 %vm139_vm0, %v114_v4  ;;  %v2744_v14 = vld [vmem:[#allocation4 + $0x30] sm:$0xff]   ;;  %v107_v16 = vld [vmem:[%s3866_s0 + $0x48] sm:$0xff]  ;;  %v2745_v17 = vld [vmem:[#allocation4 + $0x28] sm:$0xff]   ;;  %v117_v18 = vpack.c.bf16 %v105_v13, %v104_v12 }
  0x42   :  { %v106_v15 = vld [vmem:[%s3866_s0 + $0x40] sm:$0xff]  ;;  %v2746_v19 = vld [vmem:[#allocation4 + $0x20] sm:$0xff]   ;;  %v109_v22 = vld [vmem:[%s3866_s0 + $0x58] sm:$0xff] }
  0x43   :  { %2680 = vmatpush3.bf16.msra.mxu0 %v2742_v1  ;;  %v118_v20 = vpack.c.bf16 %v107_v16, %v106_v15  ;;  %v108_v21 = vld [vmem:[%s3866_s0 + $0x50] sm:$0xff]  ;;  %v110_v23 = vld [vmem:[%s3866_s0 + $0x60] sm:$0xff]  ;;  %v111_v24 = vld [vmem:[%s3866_s0 + $0x68] sm:$0xff] }
  0x44   :  { %2697 = vmatprep.subr.bf16.mxu0 %v2743_v11  ;;  %v2747_v25 = vld [vmem:[#allocation4 + $0x18] sm:$0xff]   ;;  %v119_v26 = vpack.c.bf16 %v109_v22, %v108_v21  ;;  %v120_v27 = vpack.c.bf16 %v111_v24, %v110_v23  ;;  %v112_v28 = vld [vmem:[%s3866_s0 + $0x70] sm:$0xff]  ;;  %v113_v29 = vld [vmem:[%s3866_s0 + $0x78] sm:$0xff] }
  0x45   :  { %v121_v30 = vpack.c.bf16 %v113_v29, %v112_v28  ;;  %v2748_v31 = vld [vmem:[#allocation4 + $0x10] sm:$0xff]   ;;  %v2749_v32 = vld [vmem:[#allocation4 + $0x8] sm:$0xff]   ;;  %v2750_v33 = vld [vmem:[#allocation4] sm:$0xff]  }
  0x46   :  { %2682 = vmatmul.mubr.msk.bf16.vlgmr.msra.gmra.mxu0 %vm139_vm0, %v115_v9  ;;  %v2753_v34 = vld [vmem:[%s3869_s3 + $0x74] ss:$8 sps:$4 sm:$0xff]   ;;  %v3200_v37 = vld [vmem:[%s3873_s7] ss:$0 sm:$0xff]  ;;  %v2751_v53 = vld [vmem:[%s3869_s3 + $0x70] ss:$8 sps:$4 sm:$0xff]  }
  0x47   :  { %2685 = vmatprep.mubr.msk.bf16.mxu0 %vm139_vm0, %v116_v10  ;;  %2698 = vmatpush3.bf16.msra.mxu0 %v2743_v11  ;;  %v2756_v56 = vld [vmem:[%s3869_s3 + $0x64] ss:$8 sps:$4 sm:$0xff]   ;;  %v2754_v63 = vld [vmem:[%s3869_s3 + $0x60] ss:$8 sps:$4 sm:$0xff]   ;;  %v2759_v1 = vld [vmem:[%s3869_s3 + $0x54] ss:$8 sps:$4 sm:$0xff]  }
  0x48   :  { %2699 = vmatprep.subr.bf16.mxu0 %v2744_v14  ;;  %v2757_v8 = vld [vmem:[%s3869_s3 + $0x50] ss:$8 sps:$4 sm:$0xff]   ;;  %v2762_v10 = vld [vmem:[%s3869_s3 + $0x44] ss:$8 sps:$4 sm:$0xff]  }
  0x4b   :  { %2700 = vmatpush3.bf16.msra.mxu0 %v2744_v14 }
  0x4c   :  { %2701 = vmatprep.subr.bf16.mxu0 %v2745_v17 }
  0x4e   :  { %2686 = vmatmul.mubr.msk.bf16.gmra.mxu0 %vm139_vm0, %v117_v18 }
  0x4f   :  { %2689 = vmatprep.mubr.msk.bf16.mxu0 %vm139_vm0, %v118_v20  ;;  %2702 = vmatpush3.bf16.msra.mxu0 %v2745_v17  ;;  %v2760_v17 = vld [vmem:[%s3869_s3 + $0x40] ss:$8 sps:$4 sm:$0xff]  }
  0x50   :  { %2703 = vmatprep.subr.bf16.mxu0 %v2746_v19 }
  0x53   :  { %2704 = vmatpush3.bf16.msra.mxu0 %v2746_v19  ;;  %v2765_v19 = vld [vmem:[%s3869_s3 + $0x34] ss:$8 sps:$4 sm:$0xff]  }
  0x54   :  { %2705 = vmatprep.subr.bf16.mxu0 %v2747_v25 }
  0x56   :  { %2690 = vmatmul.mubr.msk.bf16.gmra.mxu0 %vm139_vm0, %v119_v26  ;;  %v2763_v26 = vld [vmem:[%s3869_s3 + $0x30] ss:$8 sps:$4 sm:$0xff]  }
  0x57   :  { %2693 = vmatprep.mubr.msk.bf16.mxu0 %vm139_vm0, %v120_v27  ;;  %2706 = vmatpush3.bf16.msra.mxu0 %v2747_v25 }
  0x58   :  { %2707 = vmatprep.subr.bf16.mxu0 %v2748_v31 }
  0x5b   :  { %2708 = vmatpush3.bf16.msra.mxu0 %v2748_v31 }
  0x5c   :  { %2709 = vmatprep.subr.bf16.mxu0 %v2749_v32 }
  0x5e   :  { %2694 = vmatmul.mubr.msk.bf16.gmra.mxu0 %vm139_vm0, %v121_v30 }
  0x5f   :  { %2710 = vmatpush3.bf16.msra.mxu0 %v2749_v32 }
  0x60   :  { %2711 = vmatprep.subr.bf16.mxu0 %v2750_v33 }
  0x63   :  { %2712 = vmatpush3.bf16.msra.mxu0 %v2750_v33 }
  0x64   :  { %596 = vmatprep.subr.bf16.mxu0 %v2753_v34 }
 0x106   :  { %v2683_v35 = vpop.f32.mrf.mxu0 }
 0x107   :  { %v3209_v41 = vadd.f32 %v2683_v35, %v3200_v37 }
 0x108   :  { %v198_v36 = vpop.f32.mrf.mxu0 }
 0x109   :  { %v3203_v39 = vadd.f32 %v198_v36, %v3200_v37  ;;  %v263_v48 = vmax.f32 %v3209_v41, 0.0 }
 0x10a   :  { %v2684_v38 = vpop.f32.mrf.mxu0 }
 0x10b   :  { %v3206_v40 = vadd.f32 %v2684_v38, %v3200_v37  ;;  %v261_v46 = vmax.f32 %v3203_v39, 0.0  ;;  %v2766_v38 = vld [vmem:[%s3869_s3 + $0x20] ss:$8 sps:$4 sm:$0xff]  }
 0x10c   :  { %v201_v42 = vpop.f32.mrf.mxu0 }
 0x10d   :  { %v3212_v43 = vadd.f32 %v201_v42, %v3200_v37  ;;  %v264_v44 = vmax.f32 %v3206_v40, 0.0  ;;  %v2771_v42 = vld [vmem:[%s3869_s3 + $0x14] ss:$8 sps:$4 sm:$0xff]  }
 0x10e   :  { %v2687_v45 = vpop.f32.mrf.mxu0 }
 0x10f   :  { %v262_v47 = vmax.f32 %v3212_v43, 0.0  ;;  %v3219_v49 = vadd.f32 %v2687_v45, %v3200_v37  ;;  %v278_v54 = vpack.c.bf16 %v264_v44, %v263_v48  ;;  %v2769_v45 = vld [vmem:[%s3869_s3 + $0x10] ss:$8 sps:$4 sm:$0xff]  }
 0x110   :  { %v214_v50 = vpop.f32.mrf.mxu0 }
 0x111   :  { %v3222_v51 = vadd.f32 %v214_v50, %v3200_v37  ;;  %v277_v52 = vpack.c.bf16 %v262_v47, %v261_v46  ;;  %v267_v58 = vmax.f32 %v3219_v49, 0.0  ;;  %v2774_v50 = vld [vmem:[%s3869_s3 + $0x4] ss:$8 sps:$4 sm:$0xff]  }
 0x112   :  { %v2688_v55 = vpop.f32.mrf.mxu0 }
 0x113   :  { %v3239_v57 = vadd.f32 %v2688_v55, %v3200_v37  ;;  %2713 = vmatprep.mubr.bf16.mxu0 %v277_v52  ;;  %v265_v60 = vmax.f32 %v3222_v51, 0.0  ;;  %v2772_v52 = vld [vmem:[%s3869_s3] ss:$8 sps:$4 sm:$0xff]  }
 0x114   :  { %v217_v59 = vpop.f32.mrf.mxu0  ;;  %2714 = vmatmul.mubr.bf16.vlgmr.msra.gmra.mxu0 %v278_v54  ;;  %v2775_v54 = vld [vmem:[#allocation6 + $0x74] ss:$8 sps:$4 sm:$0xff]   ;;  %v2777_v55 = vld [vmem:[#allocation6 + $0x70] ss:$8 sps:$4 sm:$0xff]  }
 0x115   :  { %v268_v61 = vmax.f32 %v3239_v57, 0.0  ;;  %v3245_v62 = vadd.f32 %v217_v59, %v3200_v37  ;;  %597 = vmatpush1.bf16.msra.mxu0 %v2751_v53  ;;  %v3068_v53 = vmov 0   ;;  %962 = vmatprep.subr.bf16.mxu1 %v2775_v54  ;;  %v2780_v59 = vld [vmem:[#allocation6 + $0x60] ss:$8 sps:$4 sm:$0xff]  }
 0x116   :  { %v2691_v0 = vpop.f32.mrf.mxu0  ;;  %598 = vmatprep.subr.bf16.mxu0 %v2756_v56  ;;  %v2778_v56 = vld [vmem:[#allocation6 + $0x64] ss:$8 sps:$4 sm:$0xff]   ;;  %963 = vmatpush1.bf16.msra.mxu1 %v2777_v55 }
 0x117   :  { %v266_v2 = vmax.f32 %v3245_v62, 0.0  ;;  %v280_v3 = vpack.c.bf16 %v268_v61, %v267_v58  ;;  %v3259_v4 = vadd.f32 %v2691_v0, %v3200_v37  ;;  %964 = vmatprep.subr.bf16.mxu1 %v2778_v56  ;;  %v2783_v0 = vld [vmem:[#allocation6 + $0x50] ss:$8 sps:$4 sm:$0xff]  }
 0x118   :  { %v230_v5 = vpop.f32.mrf.mxu0 }
 0x119   :  { %v3262_v6 = vadd.f32 %v230_v5, %v3200_v37  ;;  %v279_v7 = vpack.c.bf16 %v266_v2, %v265_v60  ;;  %599 = vmatpush1.bf16.msra.mxu0 %v2754_v63  ;;  %v271_v12 = vmax.f32 %v3259_v4, 0.0  ;;  %v2781_v63 = vld [vmem:[#allocation6 + $0x54] ss:$8 sps:$4 sm:$0xff]  }
 0x11a   :  { %v2692_v9 = vpop.f32.mrf.mxu0  ;;  %600 = vmatprep.subr.bf16.mxu0 %v2759_v1  ;;  %965 = vmatpush1.bf16.msra.mxu1 %v2780_v59  ;;  %v2784_v1 = vld [vmem:[#allocation6 + $0x44] ss:$8 sps:$4 sm:$0xff]   ;;  %v2787_v5 = vld [vmem:[#allocation6 + $0x34] ss:$8 sps:$4 sm:$0xff]  }
 0x11b   :  { %v3275_v11 = vadd.f32 %v2692_v9, %v3200_v37  ;;  %2717 = vmatprep.mubr.bf16.mxu0 %v279_v7  ;;  %v269_v14 = vmax.f32 %v3262_v6, 0.0  ;;  %966 = vmatprep.subr.bf16.mxu1 %v2781_v63  ;;  %v2789_v7 = vld [vmem:[#allocation6 + $0x30] ss:$8 sps:$4 sm:$0xff]   ;;  %v2792_v9 = vld [vmem:[#allocation6 + $0x20] ss:$8 sps:$4 sm:$0xff]  }
 0x11c   :  { %v233_v13 = vpop.f32.mrf.mxu0  ;;  %2718 = vmatmul.mubr.bf16.gmra.mxu0 %v280_v3  ;;  %v2786_v3 = vld [vmem:[#allocation6 + $0x40] ss:$8 sps:$4 sm:$0xff]  }
 0x11d   :  { %v272_v15 = vmax.f32 %v3275_v11, 0.0  ;;  %v3281_v16 = vadd.f32 %v233_v13, %v3200_v37  ;;  %601 = vmatpush1.bf16.msra.mxu0 %v2757_v8  ;;  %v2790_v8 = vld [vmem:[#allocation6 + $0x24] ss:$8 sps:$4 sm:$0xff]   ;;  %v2795_v13 = vld [vmem:[#allocation6 + $0x10] ss:$8 sps:$4 sm:$0xff]  }
 0x11e   :  { %v2695_v18 = vpop.f32.mrf.mxu0  ;;  %602 = vmatprep.subr.bf16.mxu0 %v2762_v10  ;;  %967 = vmatpush1.bf16.msra.mxu1 %v2783_v0  ;;  %v2793_v10 = vld [vmem:[#allocation6 + $0x14] ss:$8 sps:$4 sm:$0xff]  }
 0x11f   :  { %v270_v20 = vmax.f32 %v3281_v16, 0.0  ;;  %v282_v21 = vpack.c.bf16 %v272_v15, %v271_v12  ;;  %v3295_v22 = vadd.f32 %v2695_v18, %v3200_v37  ;;  %968 = vmatprep.subr.bf16.mxu1 %v2784_v1  ;;  %v2798_v18 = vld [vmem:[#allocation6] ss:$8 sps:$4 sm:$0xff]  }
 0x120   :  { %v246_v23 = vpop.f32.mrf.mxu0 }
 0x121   :  { %v3298_v24 = vadd.f32 %v246_v23, %v3200_v37  ;;  %v281_v25 = vpack.c.bf16 %v270_v20, %v269_v14  ;;  %603 = vmatpush1.bf16.msra.mxu0 %v2760_v17  ;;  %v275_v29 = vmax.f32 %v3295_v22, 0.0  ;;  %v2796_v17 = vld [vmem:[#allocation6 + $0x4] ss:$8 sps:$4 sm:$0xff]   ;;  %v2823_v22 = vld [vmem:[#allocation7 + $0xe0] ss:$16 sps:$4 sm:$0xff]  }
 0x122   :  { %v2696_v27 = vpop.f32.mrf.mxu0  ;;  %604 = vmatprep.subr.bf16.mxu0 %v2765_v19  ;;  %969 = vmatpush1.bf16.msra.mxu1 %v2786_v3  ;;  %v2799_v19 = vld [vmem:[#allocation6 + $0xf4] ss:$8 sps:$4 sm:$0xff]   ;;  %v2802_v23 = vld [vmem:[#allocation6 + $0xe4] ss:$8 sps:$4 sm:$0xff]  }
 0x123   :  { %v3308_v28 = vadd.f32 %v2696_v27, %v3200_v37  ;;  %2721 = vmatprep.mubr.bf16.mxu0 %v281_v25  ;;  %v273_v31 = vmax.f32 %v3298_v24, 0.0  ;;  %970 = vmatprep.subr.bf16.mxu1 %v2787_v5  ;;  %v2804_v25 = vld [vmem:[#allocation6 + $0xe0] ss:$8 sps:$4 sm:$0xff]   ;;  %v2807_v27 = vld [vmem:[#allocation6 + $0xd0] ss:$8 sps:$4 sm:$0xff]  }
 0x124   :  { %v249_v30 = vpop.f32.mrf.mxu0  ;;  %2722 = vmatmul.mubr.bf16.gmra.mxu0 %v282_v21  ;;  %v2801_v21 = vld [vmem:[#allocation6 + $0xf0] ss:$8 sps:$4 sm:$0xff]  }
 0x125   :  { %v276_v32 = vmax.f32 %v3308_v28, 0.0  ;;  %v3314_v33 = vadd.f32 %v249_v30, %v3200_v37  ;;  %605 = vmatpush1.bf16.msra.mxu0 %v2763_v26  ;;  %v2768_v37 = vld [vmem:[%s3869_s3 + $0x24] ss:$8 sps:$4 sm:$0xff]   ;;  %v2808_v30 = vld [vmem:[#allocation6 + $0xc4] ss:$8 sps:$4 sm:$0xff]  }
 0x126   :  { %606 = vmatprep.subr.bf16.mxu0 %v2768_v37  ;;  %971 = vmatpush1.bf16.msra.mxu1 %v2789_v7  ;;  %v2805_v26 = vld [vmem:[#allocation6 + $0xd4] ss:$8 sps:$4 sm:$0xff]   ;;  %v2813_v37 = vld [vmem:[#allocation6 + $0xb0] ss:$8 sps:$4 sm:$0xff]   ;;  %v2820_v28 = vld [vmem:[#allocation6 + $0x84] ss:$8 sps:$4 sm:$0xff]  }
 0x127   :  { %v274_v34 = vmax.f32 %v3314_v33, 0.0  ;;  %v284_v35 = vpack.c.bf16 %v276_v32, %v275_v29  ;;  %972 = vmatprep.subr.bf16.mxu1 %v2790_v8 }
 0x129   :  { %v283_v36 = vpack.c.bf16 %v274_v34, %v273_v31  ;;  %607 = vmatpush1.bf16.msra.mxu0 %v2766_v38 }
 0x12a   :  { %608 = vmatprep.subr.bf16.mxu0 %v2771_v42  ;;  %973 = vmatpush1.bf16.msra.mxu1 %v2792_v9  ;;  %v3347_v42 = vld [vmem:[%s3873_s7 + $0x1] ss:$0 sm:$0xff] }
 0x12b   :  { %2725 = vmatprep.mubr.bf16.mxu0 %v283_v36  ;;  %974 = vmatprep.subr.bf16.mxu1 %v2793_v10  ;;  %v2811_v36 = vld [vmem:[#allocation6 + $0xb4] ss:$8 sps:$4 sm:$0xff]  }
 0x12c   :  { %2726 = vmatmul.mubr.bf16.gmra.mxu0 %v284_v35  ;;  %v2810_v35 = vld [vmem:[#allocation6 + $0xc0] ss:$8 sps:$4 sm:$0xff]  }
 0x12d   :  { %609 = vmatpush1.bf16.msra.mxu0 %v2769_v45  ;;  %628 = vmatprep.mubr.bf16.mxu0 %v3068_v53 }
 0x12e   :  { %610 = vmatprep.subr.bf16.mxu0 %v2774_v50  ;;  %975 = vmatpush1.bf16.msra.mxu1 %v2795_v13 }
 0x12f   :  { %976 = vmatprep.subr.bf16.mxu1 %v2796_v17 }
 0x131   :  { %611 = vmatpush1.bf16.msra.mxu0 %v2772_v52 }
 0x132   :  { %977 = vmatpush1.bf16.msra.mxu1 %v2798_v18 }
 0x133   :  { %978 = vmatprep.subr.bf16.mxu1 %v2799_v19 }
 0x136   :  { %979 = vmatpush2.bf16.msra.mxu1 %v2801_v21 }
 0x137   :  { %980 = vmatprep.subr.bf16.mxu1 %v2802_v23 }
 0x13a   :  { %981 = vmatpush2.bf16.msra.mxu1 %v2804_v25 }
 0x13b   :  { %982 = vmatprep.subr.bf16.mxu1 %v2805_v26 }
 0x13e   :  { %983 = vmatpush2.bf16.msra.mxu1 %v2807_v27 }
 0x13f   :  { %984 = vmatprep.subr.bf16.mxu1 %v2808_v30 }
 0x142   :  { %985 = vmatpush2.bf16.msra.mxu1 %v2810_v35 }
 0x143   :  { %986 = vmatprep.subr.bf16.mxu1 %v2811_v36 }
 0x146   :  { %987 = vmatpush2.bf16.msra.mxu1 %v2813_v37 }
 0x1d4   :  { %v2715_v38 = vpop.f32.mrf.mxu0 }
 0x1d5   :  { %v393_v3 = vadd.f32 %v2715_v38, %v3347_v42 }
 0x1d6   :  { %v384_v45 = vpop.f32.mrf.mxu0 }
 0x1d7   :  { %v385_v50 = vadd.f32 %v384_v45, %v3347_v42 }
 0x1d8   :  { %v2716_v52 = vpop.f32.mrf.mxu0 }
 0x1d9   :  { %v447_v55 = vadd.f32 %v385_v50, %v261_v46  ;;  %v396_v63 = vadd.f32 %v2716_v52, %v3347_v42  ;;  %v449_v46 = vadd.f32 %v393_v3, %v263_v48 }
 0x1da   :  { %v387_v54 = vpop.f32.mrf.mxu0 }
 0x1db   :  { %v388_v56 = vadd.f32 %v387_v54, %v3347_v42  ;;  %v463_v5 = vmax.f32 %v447_v55, 0.0  ;;  %v450_v9 = vadd.f32 %v396_v63, %v264_v44  ;;  %v465_v17 = vmax.f32 %v449_v46, 0.0  ;;  %v2829_v46 = vld [vmem:[#allocation7 + $0xc0] ss:$16 sps:$4 sm:$0xff]  }
 0x1dc   :  { %v2719_v59 = vpop.f32.mrf.mxu0 }
 0x1dd   :  { %v448_v0 = vadd.f32 %v388_v56, %v262_v47  ;;  %v466_v13 = vmax.f32 %v450_v9, 0.0  ;;  %v409_v25 = vadd.f32 %v2719_v59, %v3347_v42  ;;  %v2816_v9 = vld [vmem:[#allocation6 + $0xa0] ss:$8 sps:$4 sm:$0xff]  }
 0x1de   :  { %v400_v1 = vpop.f32.mrf.mxu0 }
 0x1df   :  { %v464_v7 = vmax.f32 %v448_v0, 0.0  ;;  %v401_v18 = vadd.f32 %v400_v1, %v3347_v42  ;;  %v480_v40 = vpack.c.bf16 %v466_v13, %v465_v17  ;;  %v453_v30 = vadd.f32 %v409_v25, %v267_v58  ;;  %v2837_v13 = vld [vmem:[#allocation7 + $0xa4] ss:$16 sps:$4 sm:$0xff]   ;;  %v2841_v17 = vld [vmem:[#allocation7 + $0x80] ss:$16 sps:$4 sm:$0xff]  }
 0x1e0   :  { %v2720_v8 = vpop.f32.mrf.mxu0  ;;  %v2873_v25 = vld [vmem:[#allocation7 + $0x1e4] ss:$16 sps:$4 sm:$0xff]  }
 0x1e1   :  { %v479_v10 = vpack.c.bf16 %v464_v7, %v463_v5  ;;  %v451_v21 = vadd.f32 %v401_v18, %v265_v60  ;;  %v412_v41 = vadd.f32 %v2720_v8, %v3347_v42  ;;  %v469_v36 = vmax.f32 %v453_v30, 0.0  ;;  %v2814_v8 = vld [vmem:[#allocation6 + $0xa4] ss:$8 sps:$4 sm:$0xff]   ;;  %v2883_v30 = vld [vmem:[#allocation7 + $0x1a0] ss:$16 sps:$4 sm:$0xff]  }
 0x1e2   :  { %v403_v39 = vpop.f32.mrf.mxu0  ;;  %988 = vmatprep.subr.bf16.mxu1 %v2814_v8  ;;  %v2849_v18 = vld [vmem:[#allocation7 + $0x64] ss:$16 sps:$4 sm:$0xff]   ;;  %v2832_v8 = vld [vmem:[#allocation7 + $0xc8] ss:$16 sps:$4 sm:$0xff]  }
 0x1e3   :  { %629 = vmatmul.mubr.bf16.vlgmr.msra.gmra.mxu0 %v479_v10  ;;  %v404_v43 = vadd.f32 %v403_v39, %v3347_v42  ;;  %v467_v26 = vmax.f32 %v451_v21, 0.0  ;;  %v454_v27 = vadd.f32 %v412_v41, %v268_v61  ;;  %989 = vmatpush2.bf16.msra.mxu1 %v2816_v9  ;;  %v2819_v10 = vld [vmem:[#allocation6 + $0x90] ss:$8 sps:$4 sm:$0xff]   ;;  %v2828_v39 = vld [vmem:[#allocation7 + $0xec] ss:$16 sps:$4 sm:$0xff]  }
 0x1e4   :  { %638 = vmatprep.mubr.bf16.mxu0 %v3068_v53  ;;  %v2723_v47 = vpop.f32.mrf.mxu0  ;;  %v2861_v21 = vld [vmem:[#allocation7 + $0x24] ss:$16 sps:$4 sm:$0xff]   ;;  %v2859_v41 = vld [vmem:[#allocation7 + $0x20] ss:$16 sps:$4 sm:$0xff]  }
 0x1e5   :  { %v452_v19 = vadd.f32 %v404_v43, %v266_v2  ;;  %v470_v51 = vmax.f32 %v454_v27, 0.0  ;;  %v425_v52 = vadd.f32 %v2723_v47, %v3347_v42  ;;  %v2835_v43 = vld [vmem:[#allocation7 + $0xa0] ss:$16 sps:$4 sm:$0xff]   ;;  %v2843_v47 = vld [vmem:[#allocation7 + $0x84] ss:$16 sps:$4 sm:$0xff]  }
 0x1e6   :  { %v416_v44 = vpop.f32.mrf.mxu0  ;;  %v2879_v27 = vld [vmem:[#allocation7 + $0x1c4] ss:$16 sps:$4 sm:$0xff]  }
 0x1e7   :  { %v468_v48 = vmax.f32 %v452_v19, 0.0  ;;  %v417_v37 = vadd.f32 %v416_v44, %v3347_v42  ;;  %v482_v57 = vpack.c.bf16 %v470_v51, %v469_v36  ;;  %v457_v56 = vadd.f32 %v425_v52, %v271_v12  ;;  %v2847_v19 = vld [vmem:[#allocation7 + $0x60] ss:$16 sps:$4 sm:$0xff]   ;;  %v2891_v51 = vld [vmem:[#allocation7 + $0x184] ss:$16 sps:$4 sm:$0xff]  }
 0x1e8   :  { %v2724_v23 = vpop.f32.mrf.mxu0  ;;  %v2853_v44 = vld [vmem:[#allocation7 + $0x40] ss:$16 sps:$4 sm:$0xff]  }
 0x1e9   :  { %v481_v62 = vpack.c.bf16 %v468_v48, %v467_v26  ;;  %v455_v45 = vadd.f32 %v417_v37, %v269_v14  ;;  %v428_v49 = vadd.f32 %v2724_v23, %v3347_v42  ;;  %v473_v59 = vmax.f32 %v457_v56, 0.0  ;;  %v2867_v48 = vld [vmem:[#allocation7 + $0x4] ss:$16 sps:$4 sm:$0xff]   ;;  %v2865_v23 = vld [vmem:[#allocation7] ss:$16 sps:$4 sm:$0xff]  }
 0x1ea   :  { %v419_v2 = vpop.f32.mrf.mxu0  ;;  %v2871_v26 = vld [vmem:[#allocation7 + $0x1e0] ss:$16 sps:$4 sm:$0xff]   ;;  %v506_v37 = vlaneseq }
 0x1eb   :  { %639 = vmatmul.mubr.bf16.gmra.mxu0 %v480_v40  ;;  %v420_v60 = vadd.f32 %v419_v2, %v3347_v42  ;;  %v471_v54 = vmax.f32 %v455_v45, 0.0  ;;  %v458_v55 = vadd.f32 %v428_v49, %v272_v15  ;;  %v2855_v40 = vld [vmem:[#allocation7 + $0x44] ss:$16 sps:$4 sm:$0xff]   ;;  %v2895_v36 = vld [vmem:[#allocation7 + $0x160] ss:$16 sps:$4 sm:$0xff]  }
 0x1ec   :  { %648 = vmatprep.mubr.bf16.mxu0 %v3068_v53  ;;  %v2727_v35 = vpop.f32.mrf.mxu0  ;;  %v2885_v2 = vld [vmem:[#allocation7 + $0x1a4] ss:$16 sps:$4 sm:$0xff]   ;;  %v2376_v45 = vld [vmem:[%s3873_s7 + $0x2] ss:$8 sm:$0x3] }
 0x1ed   :  { %v456_v38 = vadd.f32 %v420_v60, %v270_v20  ;;  %v474_v6 = vmax.f32 %v458_v55, 0.0  ;;  %v441_v15 = vadd.f32 %v2727_v35, %v3347_v42  ;;  %v2889_v60 = vld [vmem:[#allocation7 + $0x180] ss:$16 sps:$4 sm:$0xff]   ;;  %v2897_v35 = vld [vmem:[#allocation7 + $0x164] ss:$16 sps:$4 sm:$0xff]  }
 0x1ee   :  { %v432_v61 = vpop.f32.mrf.mxu0 }
 0x1ef   :  { %v472_v58 = vmax.f32 %v456_v38, 0.0  ;;  %v433_v63 = vadd.f32 %v432_v61, %v3347_v42  ;;  %v484_v1 = vpack.c.bf16 %v474_v6, %v473_v59  ;;  %v461_v33 = vadd.f32 %v441_v15, %v275_v29  ;;  %v2825_v29 = vld [vmem:[#allocation7 + $0xe4] ss:$16 sps:$4 sm:$0xff]  }
 0x1f0   :  { %v2728_v50 = vpop.f32.mrf.mxu0  ;;  %1562 = vmatprep.subr.bf16.mxu0 %v2825_v29  ;;  %v3404_v38 = vshrl.u32 %v506_v37, 7 }
 0x1f1   :  { %v483_v16 = vpack.c.bf16 %v472_v58, %v471_v54  ;;  %v459_v11 = vadd.f32 %v433_v63, %v273_v31  ;;  %v444_v4 = vadd.f32 %v2728_v50, %v3347_v42  ;;  %v477_v31 = vmax.f32 %v461_v33, 0.0  ;;  %1563 = vmatpush1.bf16.msra.mxu0 %v2823_v22 }
 0x1f2   :  { %v435_v20 = vpop.f32.mrf.mxu0  ;;  %v3410_v61 = vsub.s32 0, %v3404_v38 }
 0x1f3   :  { %649 = vmatmul.mubr.bf16.gmra.mxu0 %v481_v62  ;;  %v436_v14 = vadd.f32 %v435_v20, %v3347_v42  ;;  %v475_v3 = vmax.f32 %v459_v11, 0.0  ;;  %v462_v5 = vadd.f32 %v444_v4, %v276_v32  ;;  %v2817_v42 = vld [vmem:[#allocation6 + $0x94] ss:$8 sps:$4 sm:$0xff]   ;;  %v2822_v32 = vld [vmem:[#allocation6 + $0x80] ss:$8 sps:$4 sm:$0xff]  }
 0x1f4   :  { %658 = vmatprep.mubr.bf16.mxu0 %v3068_v53  ;;  %990 = vmatprep.subr.bf16.mxu1 %v2817_v42  ;;  %v2877_v62 = vld [vmem:[#allocation7 + $0x1c0] ss:$16 sps:$4 sm:$0xff]   ;;  %v3419_v50 = vrot.slane %v2376_v45, %v3410_v61 }
 0x1f5   :  { %v460_v0 = vadd.f32 %v436_v14, %v274_v34  ;;  %v478_v24 = vmax.f32 %v462_v5, 0.0  ;;  %991 = vmatpush2.bf16.msra.mxu1 %v2819_v10  ;;  %v2834_v5 = vld [vmem:[#allocation7 + $0xcc] ss:$16 sps:$4 sm:$0xff]  }
 0x1f6   :  { %992 = vmatprep.subr.bf16.mxu1 %v2820_v28  ;;  %v2840_v10 = vld [vmem:[#allocation7 + $0xac] ss:$16 sps:$4 sm:$0xff]  }
 0x1f7   :  { %v476_v12 = vmax.f32 %v460_v0, 0.0  ;;  %v486_v34 = vpack.c.bf16 %v478_v24, %v477_v31 }
 0x1f9   :  { %v485_v7 = vpack.c.bf16 %v476_v12, %v475_v3  ;;  %993 = vmatpush2.bf16.msra.mxu1 %v2822_v32  ;;  %v2826_v12 = vld [vmem:[#allocation7 + $0xe8] ss:$16 sps:$4 sm:$0xff]  }
 0x1fa   :  { %1675 = vmatprep.subr.bf16.mxu1 %v2828_v39 }
 0x1fb   :  { %659 = vmatmul.mubr.bf16.gmra.mxu0 %v482_v57  ;;  %v3407_v57 = vsub.s32 1, %v3404_v38 }
 0x1fc   :  { %668 = vmatprep.mubr.bf16.mxu0 %v3068_v53 }
 0x1fd   :  { %v3416_v58 = vrot.slane %v2376_v45, %v3407_v57 }
 0x203   :  { %669 = vmatmul.mubr.bf16.gmra.mxu0 %v483_v16 }
 0x204   :  { %678 = vmatprep.mubr.bf16.mxu0 %v3068_v53 }
 0x20b   :  { %679 = vmatmul.mubr.bf16.gmra.mxu0 %v484_v1 }
 0x20c   :  { %688 = vmatprep.mubr.bf16.mxu0 %v3068_v53 }
 0x213   :  { %689 = vmatmul.mubr.bf16.gmra.mxu0 %v485_v7 }
 0x214   :  { %698 = vmatprep.mubr.bf16.mxu0 %v3068_v53  ;;  %v2831_v53 = vld [vmem:[#allocation7 + $0xc4] ss:$16 sps:$4 sm:$0xff]  }
 0x215   :  { %1564 = vmatprep.subr.bf16.mxu0 %v2831_v53  ;;  %v2838_v53 = vld [vmem:[#allocation7 + $0xa8] ss:$16 sps:$4 sm:$0xff]  }
 0x216   :  { %1565 = vmatpush1.bf16.msra.mxu0 %v2829_v46 }
 0x217   :  { %1566 = vmatprep.subr.bf16.mxu0 %v2837_v13 }
 0x21a   :  { %1567 = vmatpush1.bf16.msra.mxu0 %v2835_v43  ;;  %v2846_v43 = vld [vmem:[#allocation7 + $0x8c] ss:$16 sps:$4 sm:$0xff]  }
 0x21b   :  { %699 = vmatmul.mubr.bf16.gmra.mxu0 %v486_v34  ;;  %1568 = vmatprep.subr.bf16.mxu0 %v2843_v47 }
 0x21e   :  { %1569 = vmatpush1.bf16.msra.mxu0 %v2841_v17 }
 0x21f   :  { %1570 = vmatprep.subr.bf16.mxu0 %v2849_v18 }
 0x222   :  { %1571 = vmatpush1.bf16.msra.mxu0 %v2847_v19 }
 0x223   :  { %1572 = vmatprep.subr.bf16.mxu0 %v2855_v40 }
 0x226   :  { %1573 = vmatpush1.bf16.msra.mxu0 %v2853_v44  ;;  %v2844_v44 = vld [vmem:[#allocation7 + $0x88] ss:$16 sps:$4 sm:$0xff]  }
 0x227   :  { %1574 = vmatprep.subr.bf16.mxu0 %v2861_v21 }
 0x22a   :  { %1575 = vmatpush1.bf16.msra.mxu0 %v2859_v41 }
 0x22b   :  { %1576 = vmatprep.subr.bf16.mxu0 %v2867_v48  ;;  %v2852_v48 = vld [vmem:[#allocation7 + $0x6c] ss:$16 sps:$4 sm:$0xff]  }
 0x22e   :  { %1577 = vmatpush1.bf16.msra.mxu0 %v2865_v23 }
 0x22f   :  { %1578 = vmatprep.subr.bf16.mxu0 %v2873_v25 }
 0x232   :  { %1579 = vmatpush2.bf16.msra.mxu0 %v2871_v26 }
 0x233   :  { %1580 = vmatprep.subr.bf16.mxu0 %v2879_v27 }
 0x236   :  { %1581 = vmatpush2.bf16.msra.mxu0 %v2877_v62 }
 0x237   :  { %1582 = vmatprep.subr.bf16.mxu0 %v2885_v2  ;;  %v2850_v2 = vld [vmem:[#allocation7 + $0x68] ss:$16 sps:$4 sm:$0xff]  }
 0x23a   :  { %1583 = vmatpush2.bf16.msra.mxu0 %v2883_v30 }
 0x23b   :  { %1584 = vmatprep.subr.bf16.mxu0 %v2891_v51 }
 0x23e   :  { %1585 = vmatpush2.bf16.msra.mxu0 %v2889_v60  ;;  %v2858_v60 = vld [vmem:[#allocation7 + $0x4c] ss:$16 sps:$4 sm:$0xff]  }
 0x23f   :  { %1586 = vmatprep.subr.bf16.mxu0 %v2897_v35 }
 0x242   :  { %1587 = vmatpush2.bf16.msra.mxu0 %v2895_v36 }
 0x2a3   :  { %v630_v49 = vpop.f32.mrf.mxu0 }
 0x2a4   :  { %v3428_v20 = vadd.f32 %v630_v49, %v3419_v50 }
 0x2a5   :  { %v632_v52 = vpop.f32.mrf.mxu0 }
 0x2a6   :  { %v3422_v55 = vadd.f32 %v632_v52, %v3416_v58  ;;  %v709_v1 = vmax.f32 %v3428_v20, 0.0  ;;  %v2856_v52 = vld [vmem:[#allocation7 + $0x48] ss:$16 sps:$4 sm:$0xff]  }
 0x2a7   :  { %v634_v54 = vpop.f32.mrf.mxu0  ;;  %v2922_v20 = vld [vmem:[#allocation9 + $0xb8] sm:$0xff]  }
 0x2a8   :  { %v3425_v16 = vadd.f32 %v634_v54, %v3419_v50  ;;  %v710_v63 = vmax.f32 %v3422_v55, 0.0 }
 0x2a9   :  { %v636_v56 = vpop.f32.mrf.mxu0 }
 0x2aa   :  { %v3431_v6 = vadd.f32 %v636_v56, %v3416_v58  ;;  %v711_v14 = vmax.f32 %v3425_v16, 0.0 }
 0x2ab   :  { %v640_v59 = vpop.f32.mrf.mxu0 }
 0x2ac   :  { %v712_v0 = vmax.f32 %v3431_v6, 0.0  ;;  %v741_v15 = vpack.c.bf16 %v711_v14, %v709_v1  ;;  %v3452_v24 = vadd.f32 %v640_v59, %v3419_v50  ;;  %v2864_v59 = vld [vmem:[#allocation7 + $0x2c] ss:$16 sps:$4 sm:$0xff]   ;;  %v2925_v6 = vld [vmem:[#allocation9 + $0xf0] sm:$0xff]  }
 0x2ad   :  { %v642_v11 = vpop.f32.mrf.mxu0 }
 0x2ae   :  { %v742_v4 = vpack.c.bf16 %v712_v0, %v710_v63  ;;  %v3446_v7 = vadd.f32 %v642_v11, %v3416_v58  ;;  %v713_v22 = vmax.f32 %v3452_v24, 0.0 }
 0x2af   :  { %v644_v3 = vpop.f32.mrf.mxu0 }
 0x2b0   :  { %v3449_v33 = vadd.f32 %v644_v3, %v3419_v50  ;;  %994 = vmatprep.mubr.bf16.mxu1 %v742_v4  ;;  %v714_v28 = vmax.f32 %v3446_v7, 0.0  ;;  %v2924_v7 = vld [vmem:[#allocation9 + $0x30] sm:$0xff]  }
 0x2b1   :  { %v646_v31 = vpop.f32.mrf.mxu0  ;;  %995 = vmatmul.mubr.bf16.vlgmr.msra.gmra.mxu1 %v741_v15 }
 0x2b2   :  { %v3455_v34 = vadd.f32 %v646_v31, %v3416_v58  ;;  %1676 = vmatpush1.bf16.msra.mxu1 %v2826_v12  ;;  %v715_v9 = vmax.f32 %v3449_v33, 0.0 }
 0x2b3   :  { %v650_v42 = vpop.f32.mrf.mxu0  ;;  %1677 = vmatprep.subr.bf16.mxu1 %v2834_v5  ;;  %v2862_v5 = vld [vmem:[#allocation7 + $0x28] ss:$16 sps:$4 sm:$0xff]  }
 0x2b4   :  { %v716_v32 = vmax.f32 %v3455_v34, 0.0  ;;  %v743_v46 = vpack.c.bf16 %v715_v9, %v713_v22  ;;  %v3476_v18 = vadd.f32 %v650_v42, %v3419_v50  ;;  %v2870_v42 = vld [vmem:[#allocation7 + $0xc] ss:$16 sps:$4 sm:$0xff]  }
 0x2b5   :  { %v652_v29 = vpop.f32.mrf.mxu0 }
 0x2b6   :  { %v744_v39 = vpack.c.bf16 %v716_v32, %v714_v28  ;;  %1678 = vmatpush1.bf16.msra.mxu1 %v2832_v8  ;;  %v3470_v47 = vadd.f32 %v652_v29, %v3416_v58  ;;  %v717_v26 = vmax.f32 %v3476_v18, 0.0 }
 0x2b7   :  { %v654_v13 = vpop.f32.mrf.mxu0  ;;  %1679 = vmatprep.subr.bf16.mxu1 %v2840_v10 }
 0x2b8   :  { %v3473_v17 = vadd.f32 %v654_v13, %v3419_v50  ;;  %1004 = vmatprep.mubr.bf16.mxu1 %v744_v39  ;;  %v718_v23 = vmax.f32 %v3470_v47, 0.0  ;;  %v2868_v13 = vld [vmem:[#allocation7 + $0x8] ss:$16 sps:$4 sm:$0xff]   ;;  %v2932_v47 = vld [vmem:[#allocation9 + $0x20] sm:$0xff]  }
 0x2b9   :  { %v656_v19 = vpop.f32.mrf.mxu0  ;;  %1005 = vmatmul.mubr.bf16.gmra.mxu1 %v743_v46 }
 0x2ba   :  { %v3479_v40 = vadd.f32 %v656_v19, %v3416_v58  ;;  %1680 = vmatpush1.bf16.msra.mxu1 %v2838_v53  ;;  %v719_v21 = vmax.f32 %v3473_v17, 0.0 }
 0x2bb   :  { %v660_v41 = vpop.f32.mrf.mxu0  ;;  %1681 = vmatprep.subr.bf16.mxu1 %v2846_v43 }
 0x2bc   :  { %v720_v25 = vmax.f32 %v3479_v40, 0.0  ;;  %v745_v30 = vpack.c.bf16 %v719_v21, %v717_v26  ;;  %v3500_v37 = vadd.f32 %v660_v41, %v3419_v50 }
 0x2bd   :  { %v662_v27 = vpop.f32.mrf.mxu0 }
 0x2be   :  { %v746_v62 = vpack.c.bf16 %v720_v25, %v718_v23  ;;  %1682 = vmatpush1.bf16.msra.mxu1 %v2844_v44  ;;  %v3494_v35 = vadd.f32 %v662_v27, %v3416_v58  ;;  %v3892_v12 = vmax.f32 %v3500_v37, 0.0  ;;  %v2876_v44 = vld [vmem:[#allocation7 + $0x1ec] ss:$16 sps:$4 sm:$0xff]  }
 0x2bf   :  { %v664_v51 = vpop.f32.mrf.mxu0  ;;  %1683 = vmatprep.subr.bf16.mxu1 %v2852_v48 }
 0x2c0   :  { %v3497_v36 = vadd.f32 %v664_v51, %v3419_v50  ;;  %1014 = vmatprep.mubr.bf16.mxu1 %v746_v62  ;;  %v3894_v11 = vmax.f32 %v3494_v35, 0.0 }
 0x2c1   :  { %v666_v45 = vpop.f32.mrf.mxu0  ;;  %1015 = vmatmul.mubr.bf16.gmra.mxu1 %v745_v30  ;;  %v2874_v30 = vld [vmem:[#allocation7 + $0x1e8] ss:$16 sps:$4 sm:$0xff]  }
 0x2c2   :  { %v3503_v49 = vadd.f32 %v666_v45, %v3416_v58  ;;  %1684 = vmatpush1.bf16.msra.mxu1 %v2850_v2  ;;  %v3893_v54 = vmax.f32 %v3497_v36, 0.0  ;;  %v2882_v45 = vld [vmem:[#allocation7 + $0x1cc] ss:$16 sps:$4 sm:$0xff]  }
 0x2c3   :  { %v670_v56 = vpop.f32.mrf.mxu0  ;;  %1685 = vmatprep.subr.bf16.mxu1 %v2858_v60 }
 0x2c4   :  { %v3889_v4 = vmax.f32 %v3503_v49, 0.0  ;;  %v747_v31 = vpack.c.bf16 %v3893_v54, %v3892_v12  ;;  %v3524_v39 = vadd.f32 %v670_v56, %v3419_v50 }
 0x2c5   :  { %v672_v15 = vpop.f32.mrf.mxu0 }
 0x2c6   :  { %v748_v3 = vpack.c.bf16 %v3889_v4, %v3894_v11  ;;  %1686 = vmatpush1.bf16.msra.mxu1 %v2856_v52  ;;  %v3518_v10 = vadd.f32 %v672_v15, %v3416_v58  ;;  %v3880_v27 = vmax.f32 %v3524_v39, 0.0  ;;  %v2910_v4 = vld [vmem:[#allocation7 + $0x128] ss:$16 sps:$4 sm:$0xff]  }
 0x2c7   :  { %v674_v8 = vpop.f32.mrf.mxu0  ;;  %1687 = vmatprep.subr.bf16.mxu1 %v2864_v59 }
 0x2c8   :  { %v3521_v29 = vadd.f32 %v674_v8, %v3419_v50  ;;  %1024 = vmatprep.mubr.bf16.mxu1 %v748_v3  ;;  %v3888_v41 = vmax.f32 %v3518_v10, 0.0 }
 0x2c9   :  { %v676_v53 = vpop.f32.mrf.mxu0  ;;  %1025 = vmatmul.mubr.bf16.gmra.mxu1 %v747_v31 }
 0x2ca   :  { %v3527_v46 = vadd.f32 %v676_v53, %v3416_v58  ;;  %1688 = vmatpush1.bf16.msra.mxu1 %v2862_v5  ;;  %v3881_v43 = vmax.f32 %v3521_v29, 0.0  ;;  %v2880_v5 = vld [vmem:[#allocation7 + $0x1c8] ss:$16 sps:$4 sm:$0xff]  }
 0x2cb   :  { %v680_v19 = vpop.f32.mrf.mxu0  ;;  %1689 = vmatprep.subr.bf16.mxu1 %v2870_v42  ;;  %v2888_v42 = vld [vmem:[#allocation7 + $0x1ac] ss:$16 sps:$4 sm:$0xff]  }
 0x2cc   :  { %v3875_v48 = vmax.f32 %v3527_v46, 0.0  ;;  %v749_v51 = vpack.c.bf16 %v3881_v43, %v3880_v27  ;;  %v3548_v59 = vadd.f32 %v680_v19, %v3419_v50 }
 0x2cd   :  { %v682_v62 = vpop.f32.mrf.mxu0 }
 0x2ce   :  { %v750_v2 = vpack.c.bf16 %v3875_v48, %v3888_v41  ;;  %1690 = vmatpush1.bf16.msra.mxu1 %v2868_v13  ;;  %v3542_v52 = vadd.f32 %v682_v62, %v3416_v58  ;;  %v2907_v41 = vld [vmem:[#allocation7 + $0x120] ss:$16 sps:$4 sm:$0xff]  }
 0x2cf   :  { %v684_v60 = vpop.f32.mrf.mxu0  ;;  %1691 = vmatprep.subr.bf16.mxu1 %v2876_v44  ;;  %v3877_v44 = vmax.f32 %v3548_v59, 0.0 }
 0x2d0   :  { %v3545_v56 = vadd.f32 %v684_v60, %v3419_v50  ;;  %1034 = vmatprep.mubr.bf16.mxu1 %v750_v2  ;;  %v3879_v53 = vmax.f32 %v3542_v52, 0.0  ;;  %v2886_v2 = vld [vmem:[#allocation7 + $0x1a8] ss:$16 sps:$4 sm:$0xff]   ;;  %v2894_v60 = vld [vmem:[#allocation7 + $0x18c] ss:$16 sps:$4 sm:$0xff]  }
 0x2d1   :  { %v686_v15 = vpop.f32.mrf.mxu0  ;;  %1035 = vmatmul.mubr.bf16.gmra.mxu1 %v749_v51 }
 0x2d2   :  { %v3551_v3 = vadd.f32 %v686_v15, %v3416_v58  ;;  %1692 = vmatpush2.bf16.msra.mxu1 %v2874_v30  ;;  %v3878_v31 = vmax.f32 %v3545_v56, 0.0 }
 0x2d3   :  { %v690_v8 = vpop.f32.mrf.mxu0  ;;  %1693 = vmatprep.subr.bf16.mxu1 %v2882_v45 }
 0x2d4   :  { %v3876_v13 = vmax.f32 %v3551_v3, 0.0  ;;  %v751_v30 = vpack.c.bf16 %v3878_v31, %v3877_v44  ;;  %v3572_v48 = vadd.f32 %v690_v8, %v3419_v50  ;;  %v2892_v44 = vld [vmem:[#allocation7 + $0x188] ss:$16 sps:$4 sm:$0xff]  }
 0x2d5   :  { %v692_v19 = vpop.f32.mrf.mxu0 }
 0x2d6   :  { %v752_v62 = vpack.c.bf16 %v3876_v13, %v3879_v53  ;;  %1694 = vmatpush2.bf16.msra.mxu1 %v2880_v5  ;;  %v3566_v45 = vadd.f32 %v692_v19, %v3416_v58 }
 0x2d7   :  { %v694_v51 = vpop.f32.mrf.mxu0  ;;  %1695 = vmatprep.subr.bf16.mxu1 %v2888_v42 }
 0x2d8   :  { %v3569_v15 = vadd.f32 %v694_v51, %v3419_v50  ;;  %1044 = vmatprep.mubr.bf16.mxu1 %v752_v62  ;;  %v3885_v19 = vmax.f32 %v3566_v45, 0.0  ;;  %v3883_v62 = vmax.f32 %v3572_v48, 0.0 }
 0x2d9   :  { %v696_v5 = vpop.f32.mrf.mxu0  ;;  %1045 = vmatmul.mubr.bf16.gmra.mxu1 %v751_v30 }
 0x2da   :  { %v3575_v13 = vadd.f32 %v696_v5, %v3416_v58  ;;  %1696 = vmatpush2.bf16.msra.mxu1 %v2886_v2  ;;  %v3884_v42 = vmax.f32 %v3569_v15, 0.0 }
 0x2db   :  { %v700_v31 = vpop.f32.mrf.mxu0  ;;  %1697 = vmatprep.subr.bf16.mxu1 %v2894_v60 }
 0x2dc   :  { %v3882_v51 = vmax.f32 %v3575_v13, 0.0  ;;  %v753_v2 = vpack.c.bf16 %v3884_v42, %v3883_v62  ;;  %v3596_v27 = vadd.f32 %v700_v31, %v3419_v50  ;;  %v2903_v31 = vld [vmem:[#allocation7 + $0x144] ss:$16 sps:$4 sm:$0xff]  }
 0x2dd   :  { %v702_v53 = vpop.f32.mrf.mxu0  ;;  %1588 = vmatprep.subr.bf16.mxu0 %v2903_v31  ;;  %v2919_v31 = vld [vmem:[#allocation9 + $0x78] sm:$0xff]  }
 0x2de   :  { %v754_v8 = vpack.c.bf16 %v3882_v51, %v3885_v19  ;;  %1698 = vmatpush2.bf16.msra.mxu1 %v2892_v44  ;;  %v3590_v60 = vadd.f32 %v702_v53, %v3416_v58  ;;  %v3890_v53 = vmax.f32 %v3596_v27, 0.0  ;;  %v2904_v19 = vld [vmem:[#allocation7 + $0x148] ss:$16 sps:$4 sm:$0xff]  }
 0x2df   :  { %v704_v30 = vpop.f32.mrf.mxu0 }
 0x2e0   :  { %v3593_v5 = vadd.f32 %v704_v30, %v3419_v50  ;;  %1054 = vmatprep.mubr.bf16.mxu1 %v754_v8  ;;  %v3887_v62 = vmax.f32 %v3590_v60, 0.0  ;;  %v2901_v30 = vld [vmem:[#allocation7 + $0x140] ss:$16 sps:$4 sm:$0xff]  }
 0x2e1   :  { %v706_v43 = vpop.f32.mrf.mxu0  ;;  %1055 = vmatmul.mubr.bf16.gmra.mxu1 %v753_v2  ;;  %v2906_v2 = vld [vmem:[#allocation7 + $0x14c] ss:$16 sps:$4 sm:$0xff]   ;;  %1589 = vmatpush2.bf16.msra.mxu0 %v2901_v30 }
 0x2e2   :  { %v3599_v44 = vadd.f32 %v706_v43, %v3416_v58  ;;  %v3891_v51 = vmax.f32 %v3593_v5, 0.0  ;;  %v2900_v58 = vld [vmem:[#allocation7 + $0x16c] ss:$16 sps:$4 sm:$0xff]   ;;  %v2898_v43 = vld [vmem:[#allocation7 + $0x168] ss:$16 sps:$4 sm:$0xff]  }
 0x2e3   :  { %1699 = vmatprep.subr.bf16.mxu1 %v2900_v58  ;;  %v2913_v58 = vld [vmem:[#allocation7 + $0x100] ss:$16 sps:$4 sm:$0xff]  }
 0x2e4   :  { %v3886_v42 = vmax.f32 %v3599_v44, 0.0  ;;  %v755_v50 = vpack.c.bf16 %v3891_v51, %v3890_v53  ;;  %1700 = vmatpush2.bf16.msra.mxu1 %v2898_v43  ;;  %v2916_v43 = vld [vmem:[#allocation7 + $0x108] ss:$16 sps:$4 sm:$0xff]  }
 0x2e5   :  { %1701 = vmatprep.subr.bf16.mxu1 %v2906_v2  ;;  %v2921_v2 = vld [vmem:[#allocation9 + $0xf8] sm:$0xff]  }
 0x2e6   :  { %v756_v8 = vpack.c.bf16 %v3886_v42, %v3887_v62  ;;  %v2909_v42 = vld [vmem:[#allocation7 + $0x124] ss:$16 sps:$4 sm:$0xff]   ;;  %v2912_v62 = vld [vmem:[#allocation7 + $0x12c] ss:$16 sps:$4 sm:$0xff]  }
 0x2e7   :  { %1590 = vmatprep.subr.bf16.mxu0 %v2909_v42 }
 0x2e8   :  { %1064 = vmatprep.mubr.bf16.mxu1 %v756_v8  ;;  %1702 = vmatpush2.bf16.msra.mxu1 %v2904_v19  ;;  %v2915_v8 = vld [vmem:[#allocation7 + $0x104] ss:$16 sps:$4 sm:$0xff]   ;;  %v2393_v19 = vld [vmem:[%s3873_s7 + $0x3] ss:$8 sm:$0x3] }
 0x2e9   :  { %1065 = vmatmul.mubr.bf16.gmra.mxu1 %v755_v50  ;;  %1703 = vmatprep.subr.bf16.mxu1 %v2912_v62  ;;  %v2918_v50 = vld [vmem:[#allocation7 + $0x10c] ss:$16 sps:$4 sm:$0xff]   ;;  %v3617_v42 = vrot.slane %v2393_v19, %v3407_v57 }
 0x2ea   :  { %1591 = vmatpush2.bf16.msra.mxu0 %v2907_v41 }
 0x2eb   :  { %1592 = vmatprep.subr.bf16.mxu0 %v2915_v8 }
 0x2ec   :  { %1704 = vmatpush2.bf16.msra.mxu1 %v2910_v4  ;;  %v3620_v4 = vrot.slane %v2393_v19, %v3410_v61 }
 0x2ed   :  { %1705 = vmatprep.subr.bf16.mxu1 %v2918_v50 }
 0x2ee   :  { %1593 = vmatpush2.bf16.msra.mxu0 %v2913_v58 }
 0x2ef   :  { %2549 = vmatprep.subr.bf16.mxu0 %v2919_v31 }
 0x2f0   :  { %1706 = vmatpush2.bf16.msra.mxu1 %v2916_v43 }
 0x2f1   :  { %2613 = vmatprep.subr.bf16.mxu1 %v2921_v2 }
 0x371   :  { %v996_v41 = vpop.f32.mrf.mxu1 }
 0x372   :  { %v997_v8 = vadd.f32 %v996_v41, %v3620_v4 }
 0x373   :  { %v998_v62 = vpop.f32.mrf.mxu1 }
 0x374   :  { %v999_v30 = vadd.f32 %v998_v62, %v3617_v42  ;;  %v1075_v19 = vadd.f32 %v997_v8, %v709_v1 }
 0x375   :  { %v1000_v50 = vpop.f32.mrf.mxu1 }
 0x376   :  { %v1001_v58 = vadd.f32 %v1000_v50, %v3620_v4  ;;  %v1076_v31 = vadd.f32 %v999_v30, %v710_v63  ;;  %v1107_v55 = vmax.f32 %v1075_v19, 0.0 }
 0x377   :  { %v1002_v43 = vpop.f32.mrf.mxu1 }
 0x378   :  { %v1077_v2 = vadd.f32 %v1001_v58, %v711_v14  ;;  %v1003_v53 = vadd.f32 %v1002_v43, %v3617_v42  ;;  %v1108_v54 = vmax.f32 %v1076_v31, 0.0  ;;  %v2920_v58 = vld [vmem:[#allocation9 + $0x38] sm:$0xff]   ;;  %v2923_v43 = vld [vmem:[#allocation9 + $0x70] sm:$0xff]  }
 0x379   :  { %v1006_v51 = vpop.f32.mrf.mxu1 }
 0x37a   :  { %v1078_v62 = vadd.f32 %v1003_v53, %v712_v0  ;;  %v1109_v41 = vmax.f32 %v1077_v2, 0.0  ;;  %v1007_v63 = vadd.f32 %v1006_v51, %v3620_v4  ;;  %v2929_v2 = vld [vmem:[#allocation9 + $0xe8] sm:$0xff]  }
 0x37b   :  { %v1008_v12 = vpop.f32.mrf.mxu1 }
 0x37c   :  { %v1110_v50 = vmax.f32 %v1078_v62, 0.0  ;;  %v1009_v11 = vadd.f32 %v1008_v12, %v3617_v42  ;;  %v1139_v1 = vpack.c.bf16 %v1109_v41, %v1107_v55  ;;  %v1079_v51 = vadd.f32 %v1007_v63, %v713_v22  ;;  %v2928_v55 = vld [vmem:[#allocation9 + $0x28] sm:$0xff]  }
 0x37d   :  { %v1010_v16 = vpop.f32.mrf.mxu1  ;;  %v2930_v63 = vld [vmem:[#allocation9 + $0xa8] sm:$0xff]  }
 0x37e   :  { %v1011_v14 = vadd.f32 %v1010_v16, %v3620_v4  ;;  %v1140_v30 = vpack.c.bf16 %v1110_v50, %v1108_v54  ;;  %v1080_v0 = vadd.f32 %v1009_v11, %v714_v28  ;;  %v2926_v28 = vld [vmem:[#allocation9 + $0xb0] sm:$0xff]   ;;  %v1111_v22 = vmax.f32 %v1079_v51, 0.0 }
 0x37f   :  { %v1012_v8 = vpop.f32.mrf.mxu1 }
 0x380   :  { %v1081_v53 = vadd.f32 %v1011_v14, %v715_v9  ;;  %v1013_v12 = vadd.f32 %v1012_v8, %v3617_v42  ;;  %1594 = vmatprep.mubr.bf16.mxu0 %v1140_v30  ;;  %1707 = vmatprep.mubr.bf16.mxu1 %v1140_v30  ;;  %v2927_v9 = vld [vmem:[#allocation9 + $0x68] sm:$0xff]   ;;  %v1112_v19 = vmax.f32 %v1080_v0, 0.0  ;;  %v2931_v30 = vld [vmem:[#allocation9 + $0x60] sm:$0xff]  }
 0x381   :  { %v1016_v54 = vpop.f32.mrf.mxu1  ;;  %1595 = vmatmul.mubr.bf16.vlgmr.msra.gmra.mxu0 %v1139_v1  ;;  %1708 = vmatmul.mubr.bf16.vlgmr.msra.gmra.mxu1 %v1139_v1 }
 0x382   :  { %v1082_v31 = vadd.f32 %v1013_v12, %v716_v32  ;;  %2550 = vmatpush3.bf16.msra.mxu0 %v2920_v58  ;;  %2614 = vmatpush3.bf16.msra.mxu1 %v2922_v20  ;;  %v1113_v11 = vmax.f32 %v1081_v53, 0.0  ;;  %v1017_v41 = vadd.f32 %v1016_v54, %v3620_v4  ;;  %v2933_v58 = vld [vmem:[#allocation9 + $0xe0] sm:$0xff]   ;;  %v2937_v12 = vld [vmem:[#allocation9 + $0xd8] sm:$0xff]  }
 0x383   :  { %v1018_v33 = vpop.f32.mrf.mxu1  ;;  %2551 = vmatprep.subr.bf16.mxu0 %v2923_v43  ;;  %2615 = vmatprep.subr.bf16.mxu1 %v2925_v6 }
 0x384   :  { %v1114_v62 = vmax.f32 %v1082_v31, 0.0  ;;  %v1019_v24 = vadd.f32 %v1018_v33, %v3617_v42  ;;  %v1141_v14 = vpack.c.bf16 %v1113_v11, %v1111_v22  ;;  %v1083_v43 = vadd.f32 %v1017_v41, %v717_v26  ;;  %v2938_v11 = vld [vmem:[#allocation9 + $0x98] sm:$0xff]  }
 0x385   :  { %v1020_v50 = vpop.f32.mrf.mxu1  ;;  %v3896_v22 = vmax.f32 %v3497_v36, 0.0 }
 0x386   :  { %v1021_v34 = vadd.f32 %v1020_v50, %v3620_v4  ;;  %v1142_v32 = vpack.c.bf16 %v1114_v62, %v1112_v19  ;;  %2552 = vmatpush3.bf16.msra.mxu0 %v2924_v7  ;;  %2616 = vmatpush3.bf16.msra.mxu1 %v2926_v28  ;;  %v1084_v20 = vadd.f32 %v1019_v24, %v718_v23  ;;  %v2934_v23 = vld [vmem:[#allocation9 + $0xa0] sm:$0xff]   ;;  %v1115_v26 = vmax.f32 %v1083_v43, 0.0  ;;  %v2936_v28 = vld [vmem:[#allocation9 + $0x18] sm:$0xff]   ;;  %v2941_v19 = vld [vmem:[#allocation9 + $0xd0] sm:$0xff]  }
 0x387   :  { %v1022_v16 = vpop.f32.mrf.mxu1  ;;  %2553 = vmatprep.subr.bf16.mxu0 %v2927_v9  ;;  %2617 = vmatprep.subr.bf16.mxu1 %v2929_v2  ;;  %v2939_v2 = vld [vmem:[#allocation9 + $0x50] sm:$0xff]   ;;  %v3895_v62 = vmax.f32 %v3494_v35, 0.0 }
 0x388   :  { %v1085_v1 = vadd.f32 %v1021_v34, %v719_v21  ;;  %v1023_v8 = vadd.f32 %v1022_v16, %v3617_v42  ;;  %1604 = vmatprep.mubr.bf16.mxu0 %v1142_v32  ;;  %1717 = vmatprep.mubr.bf16.mxu1 %v1142_v32  ;;  %v2935_v21 = vld [vmem:[#allocation9 + $0x58] sm:$0xff]   ;;  %v1116_v51 = vmax.f32 %v1084_v20, 0.0  ;;  %v3897_v34 = vmax.f32 %v3500_v37, 0.0  ;;  %v2940_v35 = vld [vmem:[#allocation9 + $0x10] sm:$0xff]   ;;  %v2945_v20 = vld [vmem:[#allocation9 + $0xc8] sm:$0xff]  }
 0x389   :  { %v1026_v6 = vpop.f32.mrf.mxu1  ;;  %1605 = vmatmul.mubr.bf16.gmra.mxu0 %v1141_v14  ;;  %1718 = vmatmul.mubr.bf16.gmra.mxu1 %v1141_v14  ;;  %v2942_v14 = vld [vmem:[#allocation9 + $0x90] sm:$0xff]  }
 0x38a   :  { %v1086_v0 = vadd.f32 %v1023_v8, %v720_v25  ;;  %2554 = vmatpush3.bf16.msra.mxu0 %v2928_v55  ;;  %2618 = vmatpush3.bf16.msra.mxu1 %v2930_v63  ;;  %v1117_v53 = vmax.f32 %v1085_v1, 0.0  ;;  %v1027_v31 = vadd.f32 %v1026_v6, %v3620_v4  ;;  %v3898_v63 = vmax.f32 %v3503_v49, 0.0 }
 0x38b   :  { %v1028_v17 = vpop.f32.mrf.mxu1  ;;  %2555 = vmatprep.subr.bf16.mxu0 %v2931_v30  ;;  %2619 = vmatprep.subr.bf16.mxu1 %v2933_v58  ;;  %v2943_v58 = vld [vmem:[#allocation9 + $0x48] sm:$0xff]  }
 0x38c   :  { %v1118_v54 = vmax.f32 %v1086_v0, 0.0  ;;  %v1029_v18 = vadd.f32 %v1028_v17, %v3617_v42  ;;  %v1143_v9 = vpack.c.bf16 %v1117_v53, %v1115_v26  ;;  %v1087_v32 = vadd.f32 %v1027_v31, %v3897_v34 }
 0x38d   :  { %v1030_v7 = vpop.f32.mrf.mxu1  ;;  %v3901_v26 = vmax.f32 %v3524_v39, 0.0 }
 0x38e   :  { %v1031_v40 = vadd.f32 %v1030_v7, %v3620_v4  ;;  %v1144_v25 = vpack.c.bf16 %v1118_v54, %v1116_v51  ;;  %2556 = vmatpush3.bf16.msra.mxu0 %v2932_v47  ;;  %2620 = vmatpush3.bf16.msra.mxu1 %v2934_v23  ;;  %v1088_v24 = vadd.f32 %v1029_v18, %v3895_v62  ;;  %v1119_v43 = vmax.f32 %v1087_v32, 0.0  ;;  %v2944_v23 = vld [vmem:[#allocation9 + $0x8] sm:$0xff]  }
 0x38f   :  { %v1032_v33 = vpop.f32.mrf.mxu1  ;;  %2557 = vmatprep.subr.bf16.mxu0 %v2935_v21  ;;  %2621 = vmatprep.subr.bf16.mxu1 %v2937_v12  ;;  %v3899_v21 = vmax.f32 %v3518_v10, 0.0  ;;  %v3900_v51 = vmax.f32 %v3521_v29, 0.0 }
 0x390   :  { %v1089_v41 = vadd.f32 %v1031_v40, %v3896_v22  ;;  %v1033_v50 = vadd.f32 %v1032_v33, %v3617_v42  ;;  %1614 = vmatprep.mubr.bf16.mxu0 %v1144_v25  ;;  %1727 = vmatprep.mubr.bf16.mxu1 %v1144_v25  ;;  %v1120_v1 = vmax.f32 %v1088_v24, 0.0  ;;  %v3902_v40 = vmax.f32 %v3527_v46, 0.0 }
 0x391   :  { %v1036_v55 = vpop.f32.mrf.mxu1  ;;  %1615 = vmatmul.mubr.bf16.gmra.mxu0 %v1143_v9  ;;  %1728 = vmatmul.mubr.bf16.gmra.mxu1 %v1143_v9 }
 0x392   :  { %v1090_v16 = vadd.f32 %v1033_v50, %v3898_v63  ;;  %2558 = vmatpush3.bf16.msra.mxu0 %v2936_v28  ;;  %2622 = vmatpush3.bf16.msra.mxu1 %v2938_v11  ;;  %v1121_v30 = vmax.f32 %v1089_v41, 0.0  ;;  %v1037_v6 = vadd.f32 %v1036_v55, %v3620_v4  ;;  %v3903_v41 = vmax.f32 %v3542_v52, 0.0 }
 0x393   :  { %v1038_v36 = vpop.f32.mrf.mxu1  ;;  %2559 = vmatprep.subr.bf16.mxu0 %v2939_v2  ;;  %2623 = vmatprep.subr.bf16.mxu1 %v2941_v19  ;;  %v3904_v50 = vmax.f32 %v3545_v56, 0.0  ;;  %v3905_v55 = vmax.f32 %v3548_v59, 0.0 }
 0x394   :  { %v1122_v8 = vmax.f32 %v1090_v16, 0.0  ;;  %v1039_v37 = vadd.f32 %v1038_v36, %v3617_v42  ;;  %v1145_v17 = vpack.c.bf16 %v1121_v30, %v1119_v43  ;;  %v1091_v31 = vadd.f32 %v1037_v6, %v3901_v26 }
 0x395   :  { %v1040_v0 = vpop.f32.mrf.mxu1 }
 0x396   :  { %v1041_v49 = vadd.f32 %v1040_v0, %v3620_v4  ;;  %v1146_v47 = vpack.c.bf16 %v1122_v8, %v1120_v1  ;;  %2560 = vmatpush3.bf16.msra.mxu0 %v2940_v35  ;;  %2624 = vmatpush3.bf16.msra.mxu1 %v2942_v14  ;;  %v1092_v12 = vadd.f32 %v1039_v37, %v3899_v21  ;;  %v1123_v9 = vmax.f32 %v1091_v31, 0.0 }
 0x397   :  { %v1042_v53 = vpop.f32.mrf.mxu1  ;;  %2561 = vmatprep.subr.bf16.mxu0 %v2943_v58  ;;  %2625 = vmatprep.subr.bf16.mxu1 %v2945_v20  ;;  %v3906_v35 = vmax.f32 %v3551_v3, 0.0  ;;  %v3907_v0 = vmax.f32 %v3566_v45, 0.0  ;;  %v3908_v3 = vmax.f32 %v3569_v15, 0.0 }
 0x398   :  { %v1093_v54 = vadd.f32 %v1041_v49, %v3900_v51  ;;  %v1043_v18 = vadd.f32 %v1042_v53, %v3617_v42  ;;  %1624 = vmatprep.mubr.bf16.mxu0 %v1146_v47  ;;  %1737 = vmatprep.mubr.bf16.mxu1 %v1146_v47  ;;  %v1124_v11 = vmax.f32 %v1092_v12, 0.0  ;;  %v3909_v53 = vmax.f32 %v3572_v48, 0.0 }
 0x399   :  { %v1046_v7 = vpop.f32.mrf.mxu1  ;;  %1625 = vmatmul.mubr.bf16.gmra.mxu0 %v1145_v17  ;;  %1738 = vmatmul.mubr.bf16.gmra.mxu1 %v1145_v17  ;;  %v3910_v12 = vmax.f32 %v3575_v13, 0.0  ;;  %v3912_v13 = vmax.f32 %v3593_v5, 0.0  ;;  %v2946_v5 = vld [vmem:[#allocation9 + $0x88] sm:$0xff]  }
 0x39a   :  { %v1094_v25 = vadd.f32 %v1043_v18, %v3902_v40  ;;  %2562 = vmatpush3.bf16.msra.mxu0 %v2944_v23  ;;  %v1125_v28 = vmax.f32 %v1093_v54, 0.0  ;;  %v1047_v2 = vadd.f32 %v1046_v7, %v3620_v4  ;;  %2626 = vmatpush3.bf16.msra.mxu1 %v2946_v5 }
 0x39b   :  { %v1048_v10 = vpop.f32.mrf.mxu1 }
 0x39c   :  { %v1126_v33 = vmax.f32 %v1094_v25, 0.0  ;;  %v1049_v29 = vadd.f32 %v1048_v10, %v3617_v42  ;;  %v1147_v22 = vpack.c.bf16 %v1125_v28, %v1123_v9  ;;  %v1095_v63 = vadd.f32 %v1047_v2, %v3905_v55  ;;  %v2426_v55 = vld [vmem:[%s3873_s7 + $0x4] ss:$8 sm:$0xf] }
 0x39d   :  { %v1050_v19 = vpop.f32.mrf.mxu1  ;;  %v3913_v2 = vmax.f32 %v3596_v27, 0.0  ;;  %v2949_v27 = vld [vmem:[#allocation9 + $0xc0] sm:$0xff]  }
 0x39e   :  { %v1051_v39 = vadd.f32 %v1050_v19, %v3620_v4  ;;  %v1148_v62 = vpack.c.bf16 %v1126_v33, %v1124_v11  ;;  %v1096_v46 = vadd.f32 %v1049_v29, %v3903_v41  ;;  %v1127_v20 = vmax.f32 %v1095_v63, 0.0  ;;  %2627 = vmatprep.subr.bf16.mxu1 %v2949_v27 }
 0x39f   :  { %v1052_v24 = vpop.f32.mrf.mxu1  ;;  %v3911_v11 = vmax.f32 %v3590_v60, 0.0 }
 0x3a0   :  { %v1097_v34 = vadd.f32 %v1051_v39, %v3904_v50  ;;  %v1053_v32 = vadd.f32 %v1052_v24, %v3617_v42  ;;  %1634 = vmatprep.mubr.bf16.mxu0 %v1148_v62  ;;  %1747 = vmatprep.mubr.bf16.mxu1 %v1148_v62  ;;  %v1128_v52 = vmax.f32 %v1096_v46, 0.0  ;;  %v2948_v50 = vld [vmem:[#allocation9] sm:$0xff]  }
 0x3a1   :  { %v1056_v16 = vpop.f32.mrf.mxu1  ;;  %1635 = vmatmul.mubr.bf16.gmra.mxu0 %v1147_v22  ;;  %1748 = vmatmul.mubr.bf16.gmra.mxu1 %v1147_v22 }
 0x3a2   :  { %v1098_v14 = vadd.f32 %v1053_v32, %v3906_v35  ;;  %v1129_v30 = vmax.f32 %v1097_v34, 0.0  ;;  %v1057_v1 = vadd.f32 %v1056_v16, %v3620_v4  ;;  %v2950_v34 = vld [vmem:[#allocation9 + $0x80] sm:$0xff]   ;;  %v1232_v32 = vsub.s32 2, %v3404_v38 }
 0x3a3   :  { %v1058_v36 = vpop.f32.mrf.mxu1  ;;  %2628 = vmatpush3.bf16.msra.mxu1 %v2950_v34  ;;  %v3724_v35 = vrot.slane %v2426_v55, %v3407_v57 }
 0x3a4   :  { %v1130_v58 = vmax.f32 %v1098_v14, 0.0  ;;  %v1059_v56 = vadd.f32 %v1058_v36, %v3617_v42  ;;  %v1149_v6 = vpack.c.bf16 %v1129_v30, %v1127_v20  ;;  %v1099_v17 = vadd.f32 %v1057_v1, %v3909_v53 }
 0x3a5   :  { %v1060_v8 = vpop.f32.mrf.mxu1  ;;  %v3729_v30 = vrot.slane %v2426_v55, %v3410_v61  ;;  %v3731_v36 = vrot.slane %v2426_v55, %v1232_v32 }
 0x3a6   :  { %v1061_v37 = vadd.f32 %v1060_v8, %v3620_v4  ;;  %v1150_v59 = vpack.c.bf16 %v1130_v58, %v1128_v52  ;;  %v1100_v49 = vadd.f32 %v1059_v56, %v3907_v0  ;;  %v1131_v31 = vmax.f32 %v1099_v17, 0.0 }
 0x3a7   :  { %v1062_v43 = vpop.f32.mrf.mxu1 }
 0x3a8   :  { %v1101_v47 = vadd.f32 %v1061_v37, %v3908_v3  ;;  %v1063_v23 = vadd.f32 %v1062_v43, %v3617_v42  ;;  %1644 = vmatprep.mubr.bf16.mxu0 %v1150_v59  ;;  %1757 = vmatprep.mubr.bf16.mxu1 %v1150_v59  ;;  %v1132_v45 = vmax.f32 %v1100_v49, 0.0 }
 0x3a9   :  { %v1066_v21 = vpop.f32.mrf.mxu1  ;;  %1645 = vmatmul.mubr.bf16.gmra.mxu0 %v1149_v6  ;;  %1758 = vmatmul.mubr.bf16.gmra.mxu1 %v1149_v6 }
 0x3aa   :  { %v1102_v51 = vadd.f32 %v1063_v23, %v3910_v12  ;;  %v1133_v54 = vmax.f32 %v1101_v47, 0.0  ;;  %v1067_v7 = vadd.f32 %v1066_v21, %v3620_v4 }
 0x3ab   :  { %v1068_v18 = vpop.f32.mrf.mxu1 }
 0x3ac   :  { %v1134_v26 = vmax.f32 %v1102_v51, 0.0  ;;  %v1069_v15 = vadd.f32 %v1068_v18, %v3617_v42  ;;  %v1151_v10 = vpack.c.bf16 %v1133_v54, %v1131_v31  ;;  %v1103_v19 = vadd.f32 %v1067_v7, %v3913_v2 }
 0x3ad   :  { %v1070_v40 = vpop.f32.mrf.mxu1 }
 0x3ae   :  { %v1071_v25 = vadd.f32 %v1070_v40, %v3620_v4  ;;  %v1152_v48 = vpack.c.bf16 %v1134_v26, %v1132_v45  ;;  %v1104_v33 = vadd.f32 %v1069_v15, %v3911_v11  ;;  %v3914_v4 = vmax.f32 %v3599_v44, 0.0 }
 0x3af   :  { %v1072_v28 = vpop.f32.mrf.mxu1  ;;  %v1135_v60 = vmax.f32 %v1103_v19, 0.0  ;;  %v1236_v44 = vsub.s32 3, %v3404_v38 }
 0x3b0   :  { %v1105_v29 = vadd.f32 %v1071_v25, %v3912_v13  ;;  %v1073_v9 = vadd.f32 %v1072_v28, %v3617_v42  ;;  %1654 = vmatprep.mubr.bf16.mxu0 %v1152_v48  ;;  %1767 = vmatprep.mubr.bf16.mxu1 %v1152_v48  ;;  %v1136_v24 = vmax.f32 %v1104_v33, 0.0  ;;  %v2947_v42 = vld [vmem:[#allocation9 + $0x40] sm:$0xff]  }
 0x3b1   :  { %1655 = vmatmul.mubr.bf16.gmra.mxu0 %v1151_v10  ;;  %1768 = vmatmul.mubr.bf16.gmra.mxu1 %v1151_v10  ;;  %v3726_v14 = vrot.slane %v2426_v55, %v1236_v44 }
 0x3b2   :  { %v1106_v39 = vadd.f32 %v1073_v9, %v3914_v4  ;;  %v1137_v62 = vmax.f32 %v1105_v29, 0.0  ;;  %2563 = vmatprep.subr.bf16.mxu0 %v2947_v42 }
 0x3b3   :  { %2564 = vmatpush3.bf16.msra.mxu0 %v2948_v50 }
 0x3b4   :  { %v1138_v22 = vmax.f32 %v1106_v39, 0.0  ;;  %v1153_v46 = vpack.c.bf16 %v1137_v62, %v1135_v60 }
 0x3b6   :  { %v1154_v41 = vpack.c.bf16 %v1138_v22, %v1136_v24 }
 0x3b8   :  { %1664 = vmatprep.mubr.bf16.mxu0 %v1154_v41  ;;  %1777 = vmatprep.mubr.bf16.mxu1 %v1154_v41 }
 0x3b9   :  { %1665 = vmatmul.mubr.bf16.gmra.mxu0 %v1153_v46  ;;  %1778 = vmatmul.mubr.bf16.gmra.mxu1 %v1153_v46 }
 0x441   :  { %v1596_v63 = vpop.f32.mrf.mxu0  ;;  %v1709_v16 = vpop.f32.mrf.mxu1 }
 0x442   :  { %v1597_v37 = vadd.f32 %v1596_v63, %v3729_v30  ;;  %v1710_v59 = vadd.f32 %v1709_v16, %v3731_v36 }
 0x443   :  { %v1598_v52 = vpop.f32.mrf.mxu0  ;;  %v1711_v58 = vpop.f32.mrf.mxu1 }
 0x444   :  { %v1599_v20 = vadd.f32 %v1598_v52, %v3724_v35  ;;  %v1712_v1 = vadd.f32 %v1711_v58, %v3726_v14  ;;  %v1788_v51 = vmax.f32 %v1597_v37, 0.0  ;;  %v1790_v54 = vmax.f32 %v1710_v59, 0.0 }
 0x445   :  { %v1600_v56 = vpop.f32.mrf.mxu0  ;;  %v1713_v38 = vpop.f32.mrf.mxu1 }
 0x446   :  { %v1601_v8 = vadd.f32 %v1600_v56, %v3729_v30  ;;  %v1714_v57 = vadd.f32 %v1713_v38, %v3731_v36  ;;  %v1789_v53 = vmax.f32 %v1599_v20, 0.0  ;;  %v1791_v17 = vmax.f32 %v1712_v1, 0.0 }
 0x447   :  { %v1602_v61 = vpop.f32.mrf.mxu0  ;;  %v1715_v43 = vpop.f32.mrf.mxu1 }
 0x448   :  { %v1603_v6 = vadd.f32 %v1602_v61, %v3724_v35  ;;  %v1716_v0 = vadd.f32 %v1715_v43, %v3726_v14  ;;  %v1792_v49 = vmax.f32 %v1601_v8, 0.0  ;;  %v1794_v3 = vmax.f32 %v1714_v57, 0.0 }
 0x449   :  { %v1606_v47 = vpop.f32.mrf.mxu0  ;;  %v1719_v23 = vpop.f32.mrf.mxu1 }
 0x44a   :  { %v1793_v21 = vmax.f32 %v1603_v6, 0.0  ;;  %v1795_v12 = vmax.f32 %v1716_v0, 0.0  ;;  %v1852_v31 = vpack.c.bf16 %v1792_v49, %v1788_v51  ;;  %v1854_v7 = vpack.c.bf16 %v1794_v3, %v1790_v54 }
 0x44b   :  { %v1608_v18 = vpop.f32.mrf.mxu0  ;;  %v1721_v45 = vpop.f32.mrf.mxu1  ;;  %v1607_v33 = vadd.f32 %v1606_v47, %v3729_v30  ;;  %v1720_v13 = vadd.f32 %v1719_v23, %v3731_v36 }
 0x44c   :  { %v1853_v26 = vpack.c.bf16 %v1793_v21, %v1789_v53  ;;  %v1855_v15 = vpack.c.bf16 %v1795_v12, %v1791_v17  ;;  %v1609_v40 = vadd.f32 %v1608_v18, %v3724_v35  ;;  %v1722_v28 = vadd.f32 %v1721_v45, %v3726_v14 }
 0x44d   :  { %v1610_v25 = vpop.f32.mrf.mxu0  ;;  %v1723_v48 = vpop.f32.mrf.mxu1  ;;  %v1796_v5 = vmax.f32 %v1607_v33, 0.0  ;;  %v1798_v42 = vmax.f32 %v1720_v13, 0.0 }
 0x44e   :  { %v1611_v10 = vadd.f32 %v1610_v25, %v3729_v30  ;;  %v1724_v11 = vadd.f32 %v1723_v48, %v3731_v36  ;;  %2173 = vmatprep.mubr.bf16.mxu0 %v1853_v26  ;;  %2270 = vmatprep.mubr.bf16.mxu1 %v1855_v15  ;;  %v1797_v22 = vmax.f32 %v1609_v40, 0.0  ;;  %v1799_v60 = vmax.f32 %v1722_v28, 0.0 }
 0x44f   :  { %v1612_v29 = vpop.f32.mrf.mxu0  ;;  %v1725_v9 = vpop.f32.mrf.mxu1  ;;  %2174 = vmatmul.mubr.bf16.vlgmr.msra.gmra.mxu0 %v1852_v31  ;;  %2271 = vmatmul.mubr.bf16.vlgmr.msra.gmra.mxu1 %v1854_v7 }
 0x450   :  { %v1613_v2 = vadd.f32 %v1612_v29, %v3724_v35  ;;  %v1726_v19 = vadd.f32 %v1725_v9, %v3726_v14  ;;  %v1800_v4 = vmax.f32 %v1611_v10, 0.0  ;;  %v1802_v39 = vmax.f32 %v1724_v11, 0.0 }
 0x451   :  { %v1616_v62 = vpop.f32.mrf.mxu0  ;;  %v1729_v24 = vpop.f32.mrf.mxu1 }
 0x452   :  { %v1801_v41 = vmax.f32 %v1613_v2, 0.0  ;;  %v1803_v46 = vmax.f32 %v1726_v19, 0.0  ;;  %v1856_v32 = vpack.c.bf16 %v1800_v4, %v1796_v5  ;;  %v1858_v55 = vpack.c.bf16 %v1802_v39, %v1798_v42 }
 0x453   :  { %v1618_v27 = vpop.f32.mrf.mxu0  ;;  %v1731_v50 = vpop.f32.mrf.mxu1  ;;  %v1617_v20 = vadd.f32 %v1616_v62, %v3729_v30  ;;  %v1730_v1 = vadd.f32 %v1729_v24, %v3731_v36 }
 0x454   :  { %v1857_v34 = vpack.c.bf16 %v1801_v41, %v1797_v22  ;;  %v1859_v44 = vpack.c.bf16 %v1803_v46, %v1799_v60  ;;  %v1619_v63 = vadd.f32 %v1618_v27, %v3724_v35  ;;  %v1732_v58 = vadd.f32 %v1731_v50, %v3726_v14 }
 0x455   :  { %v1620_v16 = vpop.f32.mrf.mxu0  ;;  %v1733_v52 = vpop.f32.mrf.mxu1  ;;  %v1804_v53 = vmax.f32 %v1617_v20, 0.0  ;;  %v1806_v17 = vmax.f32 %v1730_v1, 0.0 }
 0x456   :  { %v1621_v56 = vadd.f32 %v1620_v16, %v3729_v30  ;;  %v1734_v38 = vadd.f32 %v1733_v52, %v3731_v36  ;;  %2181 = vmatprep.mubr.bf16.mxu0 %v1857_v34  ;;  %2278 = vmatprep.mubr.bf16.mxu1 %v1859_v44  ;;  %v1805_v49 = vmax.f32 %v1619_v63, 0.0  ;;  %v1807_v3 = vmax.f32 %v1732_v58, 0.0 }
 0x457   :  { %v1622_v8 = vpop.f32.mrf.mxu0  ;;  %v1735_v57 = vpop.f32.mrf.mxu1  ;;  %2182 = vmatmul.mubr.bf16.gmra.mxu0 %v1856_v32  ;;  %2279 = vmatmul.mubr.bf16.gmra.mxu1 %v1858_v55 }
 0x458   :  { %v1623_v37 = vadd.f32 %v1622_v8, %v3724_v35  ;;  %v1736_v59 = vadd.f32 %v1735_v57, %v3726_v14  ;;  %v1808_v61 = vmax.f32 %v1621_v56, 0.0  ;;  %v1810_v43 = vmax.f32 %v1734_v38, 0.0 }
 0x459   :  { %v1626_v6 = vpop.f32.mrf.mxu0  ;;  %v1739_v0 = vpop.f32.mrf.mxu1 }
 0x45a   :  { %v1809_v47 = vmax.f32 %v1623_v37, 0.0  ;;  %v1811_v23 = vmax.f32 %v1736_v59, 0.0  ;;  %v1860_v18 = vpack.c.bf16 %v1808_v61, %v1804_v53  ;;  %v1862_v45 = vpack.c.bf16 %v1810_v43, %v1806_v17 }
 0x45b   :  { %v1628_v21 = vpop.f32.mrf.mxu0  ;;  %v1741_v12 = vpop.f32.mrf.mxu1  ;;  %v1627_v48 = vadd.f32 %v1626_v6, %v3729_v30  ;;  %v1740_v28 = vadd.f32 %v1739_v0, %v3731_v36 }
 0x45c   :  { %v1861_v51 = vpack.c.bf16 %v1809_v47, %v1805_v49  ;;  %v1863_v54 = vpack.c.bf16 %v1811_v23, %v1807_v3  ;;  %v1629_v26 = vadd.f32 %v1628_v21, %v3724_v35  ;;  %v1742_v7 = vadd.f32 %v1741_v12, %v3726_v14 }
 0x45d   :  { %v1630_v15 = vpop.f32.mrf.mxu0  ;;  %v1743_v31 = vpop.f32.mrf.mxu1  ;;  %v1812_v22 = vmax.f32 %v1627_v48, 0.0  ;;  %v1814_v60 = vmax.f32 %v1740_v28, 0.0 }
 0x45e   :  { %v1631_v40 = vadd.f32 %v1630_v15, %v3729_v30  ;;  %v1744_v25 = vadd.f32 %v1743_v31, %v3731_v36  ;;  %2189 = vmatprep.mubr.bf16.mxu0 %v1861_v51  ;;  %2286 = vmatprep.mubr.bf16.mxu1 %v1863_v54  ;;  %v1813_v4 = vmax.f32 %v1629_v26, 0.0  ;;  %v1815_v39 = vmax.f32 %v1742_v7, 0.0 }
 0x45f   :  { %v1632_v10 = vpop.f32.mrf.mxu0  ;;  %v1745_v11 = vpop.f32.mrf.mxu1  ;;  %2190 = vmatmul.mubr.bf16.gmra.mxu0 %v1860_v18  ;;  %2287 = vmatmul.mubr.bf16.gmra.mxu1 %v1862_v45 }
 0x460   :  { %v1633_v33 = vadd.f32 %v1632_v10, %v3724_v35  ;;  %v1746_v13 = vadd.f32 %v1745_v11, %v3726_v14  ;;  %v1816_v29 = vmax.f32 %v1631_v40, 0.0  ;;  %v1818_v9 = vmax.f32 %v1744_v25, 0.0 }
 0x461   :  { %v1636_v2 = vpop.f32.mrf.mxu0  ;;  %v1749_v19 = vpop.f32.mrf.mxu1 }
 0x462   :  { %v1817_v62 = vmax.f32 %v1633_v33, 0.0  ;;  %v1819_v24 = vmax.f32 %v1746_v13, 0.0  ;;  %v1864_v27 = vpack.c.bf16 %v1816_v29, %v1812_v22  ;;  %v1866_v50 = vpack.c.bf16 %v1818_v9, %v1814_v60 }
 0x463   :  { %v1638_v41 = vpop.f32.mrf.mxu0  ;;  %v1751_v46 = vpop.f32.mrf.mxu1  ;;  %v1637_v52 = vadd.f32 %v1636_v2, %v3729_v30  ;;  %v1750_v58 = vadd.f32 %v1749_v19, %v3731_v36 }
 0x464   :  { %v1865_v5 = vpack.c.bf16 %v1817_v62, %v1813_v4  ;;  %v1867_v42 = vpack.c.bf16 %v1819_v24, %v1815_v39  ;;  %v1639_v34 = vadd.f32 %v1638_v41, %v3724_v35  ;;  %v1752_v55 = vadd.f32 %v1751_v46, %v3726_v14 }
 0x465   :  { %v1640_v44 = vpop.f32.mrf.mxu0  ;;  %v1753_v32 = vpop.f32.mrf.mxu1  ;;  %v1820_v49 = vmax.f32 %v1637_v52, 0.0  ;;  %v1822_v3 = vmax.f32 %v1750_v58, 0.0 }
 0x466   :  { %v1641_v63 = vadd.f32 %v1640_v44, %v3729_v30  ;;  %v1754_v16 = vadd.f32 %v1753_v32, %v3731_v36  ;;  %2197 = vmatprep.mubr.bf16.mxu0 %v1865_v5  ;;  %2294 = vmatprep.mubr.bf16.mxu1 %v1867_v42  ;;  %v1821_v61 = vmax.f32 %v1639_v34, 0.0  ;;  %v1823_v43 = vmax.f32 %v1752_v55, 0.0 }
 0x467   :  { %v1642_v56 = vpop.f32.mrf.mxu0  ;;  %v1755_v38 = vpop.f32.mrf.mxu1  ;;  %2198 = vmatmul.mubr.bf16.gmra.mxu0 %v1864_v27  ;;  %2295 = vmatmul.mubr.bf16.gmra.mxu1 %v1866_v50 }
 0x468   :  { %v1643_v20 = vadd.f32 %v1642_v56, %v3724_v35  ;;  %v1756_v1 = vadd.f32 %v1755_v38, %v3726_v14  ;;  %v1824_v8 = vmax.f32 %v1641_v63, 0.0  ;;  %v1826_v57 = vmax.f32 %v1754_v16, 0.0 }
 0x469   :  { %v1646_v37 = vpop.f32.mrf.mxu0  ;;  %v1759_v59 = vpop.f32.mrf.mxu1 }
 0x46a   :  { %v1825_v6 = vmax.f32 %v1643_v20, 0.0  ;;  %v1827_v0 = vmax.f32 %v1756_v1, 0.0  ;;  %v1868_v21 = vpack.c.bf16 %v1824_v8, %v1820_v49  ;;  %v1870_v12 = vpack.c.bf16 %v1826_v57, %v1822_v3 }
 0x46b   :  { %v1648_v47 = vpop.f32.mrf.mxu0  ;;  %v1761_v23 = vpop.f32.mrf.mxu1  ;;  %v1647_v31 = vadd.f32 %v1646_v37, %v3729_v30  ;;  %v1760_v7 = vadd.f32 %v1759_v59, %v3731_v36 }
 0x46c   :  { %v1869_v53 = vpack.c.bf16 %v1825_v6, %v1821_v61  ;;  %v1871_v17 = vpack.c.bf16 %v1827_v0, %v1823_v43  ;;  %v1649_v51 = vadd.f32 %v1648_v47, %v3724_v35  ;;  %v1762_v45 = vadd.f32 %v1761_v23, %v3726_v14 }
 0x46d   :  { %v1650_v54 = vpop.f32.mrf.mxu0  ;;  %v1763_v18 = vpop.f32.mrf.mxu1  ;;  %v1828_v4 = vmax.f32 %v1647_v31, 0.0  ;;  %v1830_v39 = vmax.f32 %v1760_v7, 0.0 }
 0x46e   :  { %v1651_v26 = vadd.f32 %v1650_v54, %v3729_v30  ;;  %v1764_v15 = vadd.f32 %v1763_v18, %v3731_v36  ;;  %2205 = vmatprep.mubr.bf16.mxu0 %v1869_v53  ;;  %2302 = vmatprep.mubr.bf16.mxu1 %v1871_v17  ;;  %v1829_v29 = vmax.f32 %v1649_v51, 0.0  ;;  %v1831_v9 = vmax.f32 %v1762_v45, 0.0 }
 0x46f   :  { %v1652_v40 = vpop.f32.mrf.mxu0  ;;  %v1765_v25 = vpop.f32.mrf.mxu1  ;;  %2206 = vmatmul.mubr.bf16.gmra.mxu0 %v1868_v21  ;;  %2303 = vmatmul.mubr.bf16.gmra.mxu1 %v1870_v12 }
 0x470   :  { %v1653_v48 = vadd.f32 %v1652_v40, %v3724_v35  ;;  %v1766_v28 = vadd.f32 %v1765_v25, %v3726_v14  ;;  %v1832_v10 = vmax.f32 %v1651_v26, 0.0  ;;  %v1834_v11 = vmax.f32 %v1764_v15, 0.0 }
 0x471   :  { %v1656_v33 = vpop.f32.mrf.mxu0  ;;  %v1769_v13 = vpop.f32.mrf.mxu1 }
 0x472   :  { %v1833_v2 = vmax.f32 %v1653_v48, 0.0  ;;  %v1835_v19 = vmax.f32 %v1766_v28, 0.0  ;;  %v1872_v41 = vpack.c.bf16 %v1832_v10, %v1828_v4  ;;  %v1874_v46 = vpack.c.bf16 %v1834_v11, %v1830_v39 }
 0x473   :  { %v1658_v62 = vpop.f32.mrf.mxu0  ;;  %v1771_v24 = vpop.f32.mrf.mxu1  ;;  %v1657_v32 = vadd.f32 %v1656_v33, %v3729_v30  ;;  %v1770_v55 = vadd.f32 %v1769_v13, %v3731_v36 }
 0x474   :  { %v1873_v22 = vpack.c.bf16 %v1833_v2, %v1829_v29  ;;  %v1875_v60 = vpack.c.bf16 %v1835_v19, %v1831_v9  ;;  %v1659_v5 = vadd.f32 %v1658_v62, %v3724_v35  ;;  %v1772_v50 = vadd.f32 %v1771_v24, %v3726_v14 }
 0x475   :  { %v1660_v42 = vpop.f32.mrf.mxu0  ;;  %v1773_v27 = vpop.f32.mrf.mxu1  ;;  %v1836_v61 = vmax.f32 %v1657_v32, 0.0  ;;  %v1838_v43 = vmax.f32 %v1770_v55, 0.0 }
 0x476   :  { %v1661_v34 = vadd.f32 %v1660_v42, %v3729_v30  ;;  %v1774_v44 = vadd.f32 %v1773_v27, %v3731_v36  ;;  %2213 = vmatprep.mubr.bf16.mxu0 %v1873_v22  ;;  %2310 = vmatprep.mubr.bf16.mxu1 %v1875_v60  ;;  %v1837_v8 = vmax.f32 %v1659_v5, 0.0  ;;  %v1839_v57 = vmax.f32 %v1772_v50, 0.0 }
 0x477   :  { %v1662_v63 = vpop.f32.mrf.mxu0  ;;  %v1775_v16 = vpop.f32.mrf.mxu1  ;;  %2214 = vmatmul.mubr.bf16.gmra.mxu0 %v1872_v41  ;;  %2311 = vmatmul.mubr.bf16.gmra.mxu1 %v1874_v46 }
 0x478   :  { %v1663_v52 = vadd.f32 %v1662_v63, %v3724_v35  ;;  %v1776_v58 = vadd.f32 %v1775_v16, %v3726_v14  ;;  %v1840_v56 = vmax.f32 %v1661_v34, 0.0  ;;  %v1842_v38 = vmax.f32 %v1774_v44, 0.0 }
 0x479   :  { %v1666_v20 = vpop.f32.mrf.mxu0  ;;  %v1779_v1 = vpop.f32.mrf.mxu1 }
 0x47a   :  { %v1841_v37 = vmax.f32 %v1663_v52, 0.0  ;;  %v1843_v59 = vmax.f32 %v1776_v58, 0.0  ;;  %v1876_v47 = vpack.c.bf16 %v1840_v56, %v1836_v61  ;;  %v1878_v23 = vpack.c.bf16 %v1842_v38, %v1838_v43 }
 0x47b   :  { %v1668_v6 = vpop.f32.mrf.mxu0  ;;  %v1781_v0 = vpop.f32.mrf.mxu1  ;;  %v1667_v18 = vadd.f32 %v1666_v20, %v3729_v30  ;;  %v1780_v45 = vadd.f32 %v1779_v1, %v3731_v36 }
 0x47c   :  { %v1877_v49 = vpack.c.bf16 %v1841_v37, %v1837_v8  ;;  %v1879_v3 = vpack.c.bf16 %v1843_v59, %v1839_v57  ;;  %v1669_v53 = vadd.f32 %v1668_v6, %v3724_v35  ;;  %v1782_v12 = vadd.f32 %v1781_v0, %v3726_v14 }
 0x47d   :  { %v1670_v17 = vpop.f32.mrf.mxu0  ;;  %v1783_v21 = vpop.f32.mrf.mxu1  ;;  %v1844_v33 = vmax.f32 %v1667_v18, 0.0  ;;  %v1846_v13 = vmax.f32 %v1780_v45, 0.0 }
 0x47e   :  { %v1671_v51 = vadd.f32 %v1670_v17, %v3729_v30  ;;  %v1784_v54 = vadd.f32 %v1783_v21, %v3731_v36  ;;  %2221 = vmatprep.mubr.bf16.mxu0 %v1877_v49  ;;  %2318 = vmatprep.mubr.bf16.mxu1 %v1879_v3  ;;  %v1845_v48 = vmax.f32 %v1669_v53, 0.0  ;;  %v1847_v28 = vmax.f32 %v1782_v12, 0.0 }
 0x47f   :  { %v1672_v26 = vpop.f32.mrf.mxu0  ;;  %v1785_v15 = vpop.f32.mrf.mxu1  ;;  %2222 = vmatmul.mubr.bf16.gmra.mxu0 %v1876_v47  ;;  %2319 = vmatmul.mubr.bf16.gmra.mxu1 %v1878_v23 }
 0x480   :  { %v1673_v31 = vadd.f32 %v1672_v26, %v3724_v35  ;;  %v1786_v7 = vadd.f32 %v1785_v15, %v3726_v14  ;;  %v1848_v40 = vmax.f32 %v1671_v51, 0.0  ;;  %v1850_v25 = vmax.f32 %v1784_v54, 0.0  ;;  %v3800_v14 = vld [vmem:[%s3873_s7 + $0x5] ss:$0 sm:$0xff] }
 0x482   :  { %v1849_v10 = vmax.f32 %v1673_v31, 0.0  ;;  %v1851_v11 = vmax.f32 %v1786_v7, 0.0  ;;  %v1880_v9 = vpack.c.bf16 %v1848_v40, %v1844_v33  ;;  %v1882_v36 = vpack.c.bf16 %v1850_v25, %v1846_v13 }
 0x484   :  { %v1881_v29 = vpack.c.bf16 %v1849_v10, %v1845_v48  ;;  %v1883_v30 = vpack.c.bf16 %v1851_v11, %v1847_v28 }
 0x486   :  { %2229 = vmatprep.mubr.bf16.mxu0 %v1881_v29  ;;  %2326 = vmatprep.mubr.bf16.mxu1 %v1883_v30 }
 0x487   :  { %2230 = vmatmul.mubr.bf16.gmra.mxu0 %v1880_v9  ;;  %2327 = vmatmul.mubr.bf16.gmra.mxu1 %v1882_v36 }
 0x50f   :  { %v2565_v2 = vpop.f32.mrf.mxu0  ;;  %v2629_v35 = vpop.f32.mrf.mxu1 }
 0x511   :  { %v2566_v19 = vpop.f32.mrf.mxu0  ;;  %v2630_v4 = vpop.f32.mrf.mxu1 }
 0x512   :  { %v2567_v39 = vadd.f32 %v2566_v19, %v2565_v2  ;;  %v2631_v60 = vadd.f32 %v2630_v4, %v2629_v35 }
 0x513   :  { %v2568_v62 = vpop.f32.mrf.mxu0  ;;  %v2632_v24 = vpop.f32.mrf.mxu1 }
 0x514   :  { %v2176_v22 = vadd.f32 %v2567_v39, %v3800_v14 }
 0x515   :  { %v2569_v41 = vpop.f32.mrf.mxu0  ;;  %v2633_v46 = vpop.f32.mrf.mxu1 }
 0x516   :  { %v2273_v5 = vadd.f32 %v2631_v60, %v2176_v22  ;;  %v2570_v42 = vadd.f32 %v2569_v41, %v2568_v62  ;;  %v2634_v44 = vadd.f32 %v2633_v46, %v2632_v24 }
 0x517   :  { %v2571_v27 = vpop.f32.mrf.mxu0  ;;  %v2635_v50 = vpop.f32.mrf.mxu1 }
 0x518   :  { %2335 = vst [vmem:[%s3874_s8] sm:$0xff] %v2273_v5  ;;  %v2179_v34 = vadd.f32 %v2570_v42, %v3800_v14 }
 0x519   :  { %v2572_v32 = vpop.f32.mrf.mxu0  ;;  %v2636_v55 = vpop.f32.mrf.mxu1 }
 0x51a   :  { %v2276_v63 = vadd.f32 %v2634_v44, %v2179_v34  ;;  %v2573_v16 = vadd.f32 %v2572_v32, %v2571_v27  ;;  %v2637_v38 = vadd.f32 %v2636_v55, %v2635_v50 }
 0x51b   :  { %v2574_v52 = vpop.f32.mrf.mxu0  ;;  %v2638_v58 = vpop.f32.mrf.mxu1 }
 0x51c   :  { %2336 = vst [vmem:[%s3874_s8 + $0x8] sm:$0xff] %v2276_v63  ;;  %v2184_v56 = vadd.f32 %v2573_v16, %v3800_v14 }
 0x51d   :  { %v2575_v20 = vpop.f32.mrf.mxu0  ;;  %v2639_v1 = vpop.f32.mrf.mxu1 }
 0x51e   :  { %v2281_v8 = vadd.f32 %v2637_v38, %v2184_v56  ;;  %v2576_v57 = vadd.f32 %v2575_v20, %v2574_v52  ;;  %v2640_v43 = vadd.f32 %v2639_v1, %v2638_v58 }
 0x51f   :  { %v2577_v37 = vpop.f32.mrf.mxu0  ;;  %v2641_v59 = vpop.f32.mrf.mxu1 }
 0x520   :  { %2337 = vst [vmem:[%s3874_s8 + $0x10] sm:$0xff] %v2281_v8  ;;  %v2187_v61 = vadd.f32 %v2576_v57, %v3800_v14 }
 0x521   :  { %v2578_v6 = vpop.f32.mrf.mxu0  ;;  %v2642_v0 = vpop.f32.mrf.mxu1 }
 0x522   :  { %v2284_v49 = vadd.f32 %v2640_v43, %v2187_v61  ;;  %v2579_v3 = vadd.f32 %v2578_v6, %v2577_v37  ;;  %v2643_v17 = vadd.f32 %v2642_v0, %v2641_v59 }
 0x523   :  { %v2580_v47 = vpop.f32.mrf.mxu0  ;;  %v2644_v23 = vpop.f32.mrf.mxu1 }
 0x524   :  { %2338 = vst [vmem:[%s3874_s8 + $0x18] sm:$0xff] %v2284_v49  ;;  %v2192_v53 = vadd.f32 %v2579_v3, %v3800_v14 }
 0x525   :  { %v2581_v21 = vpop.f32.mrf.mxu0  ;;  %v2645_v12 = vpop.f32.mrf.mxu1 }
 0x526   :  { %v2289_v51 = vadd.f32 %v2643_v17, %v2192_v53  ;;  %v2582_v54 = vadd.f32 %v2581_v21, %v2580_v47  ;;  %v2646_v15 = vadd.f32 %v2645_v12, %v2644_v23 }
 0x527   :  { %v2583_v18 = vpop.f32.mrf.mxu0  ;;  %v2647_v45 = vpop.f32.mrf.mxu1 }
 0x528   :  { %2339 = vst [vmem:[%s3874_s8 + $0x20] sm:$0xff] %v2289_v51  ;;  %v2195_v26 = vadd.f32 %v2582_v54, %v3800_v14 }
 0x529   :  { %v2584_v31 = vpop.f32.mrf.mxu0  ;;  %v2648_v7 = vpop.f32.mrf.mxu1 }
 0x52a   :  { %v2292_v40 = vadd.f32 %v2646_v15, %v2195_v26  ;;  %v2585_v25 = vadd.f32 %v2584_v31, %v2583_v18  ;;  %v2649_v11 = vadd.f32 %v2648_v7, %v2647_v45 }
 0x52b   :  { %v2586_v48 = vpop.f32.mrf.mxu0  ;;  %v2650_v28 = vpop.f32.mrf.mxu1 }
 0x52c   :  { %2340 = vst [vmem:[%s3874_s8 + $0x28] sm:$0xff] %v2292_v40  ;;  %v2200_v10 = vadd.f32 %v2585_v25, %v3800_v14 }
 0x52d   :  { %v2587_v33 = vpop.f32.mrf.mxu0  ;;  %v2651_v13 = vpop.f32.mrf.mxu1 }
 0x52e   :  { %v2297_v29 = vadd.f32 %v2649_v11, %v2200_v10  ;;  %v2588_v30 = vadd.f32 %v2587_v33, %v2586_v48  ;;  %v2652_v35 = vadd.f32 %v2651_v13, %v2650_v28 }
 0x52f   :  { %v2589_v9 = vpop.f32.mrf.mxu0  ;;  %v2653_v36 = vpop.f32.mrf.mxu1 }
 0x530   :  { %2341 = vst [vmem:[%s3874_s8 + $0x30] sm:$0xff] %v2297_v29  ;;  %v2203_v2 = vadd.f32 %v2588_v30, %v3800_v14 }
 0x531   :  { %v2590_v19 = vpop.f32.mrf.mxu0  ;;  %v2654_v4 = vpop.f32.mrf.mxu1 }
 0x532   :  { %v2300_v39 = vadd.f32 %v2652_v35, %v2203_v2  ;;  %v2591_v62 = vadd.f32 %v2590_v19, %v2589_v9  ;;  %v2655_v41 = vadd.f32 %v2654_v4, %v2653_v36 }
 0x533   :  { %v2592_v24 = vpop.f32.mrf.mxu0  ;;  %v2656_v22 = vpop.f32.mrf.mxu1 }
 0x534   :  { %2342 = vst [vmem:[%s3874_s8 + $0x38] sm:$0xff] %v2300_v39  ;;  %v2208_v60 = vadd.f32 %v2591_v62, %v3800_v14 }
 0x535   :  { %v2593_v46 = vpop.f32.mrf.mxu0  ;;  %v2657_v5 = vpop.f32.mrf.mxu1 }
 0x536   :  { %v2305_v42 = vadd.f32 %v2655_v41, %v2208_v60  ;;  %v2594_v27 = vadd.f32 %v2593_v46, %v2592_v24  ;;  %v2658_v32 = vadd.f32 %v2657_v5, %v2656_v22 }
 0x537   :  { %v2595_v50 = vpop.f32.mrf.mxu0  ;;  %v2659_v34 = vpop.f32.mrf.mxu1 }
 0x538   :  { %2343 = vst [vmem:[%s3874_s8 + $0x40] sm:$0xff] %v2305_v42  ;;  %v2211_v44 = vadd.f32 %v2594_v27, %v3800_v14 }
 0x539   :  { %v2596_v55 = vpop.f32.mrf.mxu0  ;;  %v2660_v63 = vpop.f32.mrf.mxu1 }
 0x53a   :  { %v2308_v16 = vadd.f32 %v2658_v32, %v2211_v44  ;;  %v2597_v52 = vadd.f32 %v2596_v55, %v2595_v50  ;;  %v2661_v20 = vadd.f32 %v2660_v63, %v2659_v34 }
 0x53b   :  { %v2598_v58 = vpop.f32.mrf.mxu0  ;;  %v2662_v56 = vpop.f32.mrf.mxu1 }
 0x53c   :  { %2344 = vst [vmem:[%s3874_s8 + $0x48] sm:$0xff] %v2308_v16  ;;  %v2216_v38 = vadd.f32 %v2597_v52, %v3800_v14 }
 0x53d   :  { %v2599_v1 = vpop.f32.mrf.mxu0  ;;  %v2663_v8 = vpop.f32.mrf.mxu1 }
 0x53e   :  { %v2313_v57 = vadd.f32 %v2661_v20, %v2216_v38  ;;  %v2600_v37 = vadd.f32 %v2599_v1, %v2598_v58  ;;  %v2664_v6 = vadd.f32 %v2663_v8, %v2662_v56 }
 0x53f   :  { %v2601_v59 = vpop.f32.mrf.mxu0  ;;  %v2665_v61 = vpop.f32.mrf.mxu1 }
 0x540   :  { %2345 = vst [vmem:[%s3874_s8 + $0x50] sm:$0xff] %v2313_v57  ;;  %v2219_v43 = vadd.f32 %v2600_v37, %v3800_v14 }
 0x541   :  { %v2602_v0 = vpop.f32.mrf.mxu0  ;;  %v2666_v49 = vpop.f32.mrf.mxu1 }
 0x542   :  { %v2316_v3 = vadd.f32 %v2664_v6, %v2219_v43  ;;  %v2603_v47 = vadd.f32 %v2602_v0, %v2601_v59  ;;  %v2667_v21 = vadd.f32 %v2666_v49, %v2665_v61 }
 0x543   :  { %v2604_v23 = vpop.f32.mrf.mxu0  ;;  %v2668_v53 = vpop.f32.mrf.mxu1 }
 0x544   :  { %2346 = vst [vmem:[%s3874_s8 + $0x58] sm:$0xff] %v2316_v3  ;;  %v2224_v17 = vadd.f32 %v2603_v47, %v3800_v14 }
 0x545   :  { %v2605_v12 = vpop.f32.mrf.mxu0  ;;  %v2669_v51 = vpop.f32.mrf.mxu1 }
 0x546   :  { %v2321_v54 = vadd.f32 %v2667_v21, %v2224_v17  ;;  %v2606_v18 = vadd.f32 %v2605_v12, %v2604_v23  ;;  %v2670_v31 = vadd.f32 %v2669_v51, %v2668_v53 }
 0x547   :  { %v2607_v45 = vpop.f32.mrf.mxu0  ;;  %v2671_v26 = vpop.f32.mrf.mxu1 }
 0x548   :  { %2347 = vst [vmem:[%s3874_s8 + $0x60] sm:$0xff] %v2321_v54  ;;  %v2227_v15 = vadd.f32 %v2606_v18, %v3800_v14 }
 0x549   :  { %v2608_v7 = vpop.f32.mrf.mxu0  ;;  %v2672_v40 = vpop.f32.mrf.mxu1 }
 0x54a   :  { %v2324_v25 = vadd.f32 %v2670_v31, %v2227_v15  ;;  %v2609_v48 = vadd.f32 %v2608_v7, %v2607_v45  ;;  %v2673_v33 = vadd.f32 %v2672_v40, %v2671_v26 }
 0x54b   :  { %v2610_v28 = vpop.f32.mrf.mxu0  ;;  %v2674_v10 = vpop.f32.mrf.mxu1 }
 0x54c   :  { %2348 = vst [vmem:[%s3874_s8 + $0x68] sm:$0xff] %v2324_v25  ;;  %v2232_v11 = vadd.f32 %v2609_v48, %v3800_v14 }
 0x54d   :  { %v2611_v13 = vpop.f32.mrf.mxu0  ;;  %v2675_v29 = vpop.f32.mrf.mxu1 }
 0x54e   :  { %v2329_v30 = vadd.f32 %v2673_v33, %v2232_v11  ;;  %v2612_v9 = vadd.f32 %v2611_v13, %v2610_v28  ;;  %v2676_v2 = vadd.f32 %v2675_v29, %v2674_v10 }
 0x550   :  { %2349 = vst [vmem:[%s3874_s8 + $0x70] sm:$0xff] %v2329_v30  ;;  %v2235_v36 = vadd.f32 %v2612_v9, %v3800_v14 }
 0x552   :  { %v2332_v35 = vadd.f32 %v2676_v2, %v2235_v36 }
 0x554   :  { %2350 = vst [vmem:[%s3874_s8 + $0x78] sm:$0xff] %v2332_v35 }
 0x555   :  { %2355 = vsyncpa [#allocation3], 1 }
 0x556   :  { %2356 = vsyncpa [#allocation5], 1 }
 0x557   :  { %2357 = vsyncpa [#allocation8], 1 }

</bundles_post_ra>
